<compile_context>
chip_gen: v7x
topology: tpu7x:2x2x1
jax: 0.10.0
libtpu: 0.0.40
codegen_flags: <defaults>
</compile_context>

<pallas_src>
import functools

import jax
import jax.numpy as jnp
from jax.experimental import pallas as pl
from jax.experimental.pallas import tpu as pltpu

_MiB = 1024 * 1024


# ---------------------------------------------------------------------------
# Small helpers
# ---------------------------------------------------------------------------
def _round_up(a, b):
    return -(-int(a) // int(b)) * int(b)


def _vmem_bytes(rows, cols, dtype):
    """VMEM footprint of a (rows, cols) array including TPU layout padding."""
    dt = jnp.dtype(dtype)
    sublane = {4: 8, 2: 16, 1: 32}.get(dt.itemsize, 8)
    return _round_up(rows, sublane) * _round_up(cols, 128) * dt.itemsize


def _single_footprint(x_shape, x_dtype, w_shape, w_dtype, out_shape, out_dtype):
    fp = (_vmem_bytes(*x_shape, x_dtype)
          + _vmem_bytes(*w_shape, w_dtype)
          + _vmem_bytes(*out_shape, out_dtype))
    if jnp.dtype(w_dtype) != jnp.dtype(x_dtype):
        fp += _vmem_bytes(*w_shape, x_dtype)   # in-kernel up-cast copy of W
    return fp


def _clamp_tile(t, dim):
    """Tile sizes must be multiples of 128 (lane dim in either orientation)."""
    return max(128, min(int(t), _round_up(dim, 128)))


@functools.lru_cache(maxsize=None)
def _tpu_config():
    """Per-generation tile sizes, single-step budget, and scoped-VMEM limits."""
    vmem = 64 * _MiB   # conservative default (v7x-class config is safe everywhere)
    try:
        info = pltpu.get_tpu_info()
        vmem = int(getattr(info, "vmem_capacity_bytes", vmem))
    except Exception:
        pass
    if vmem <= 96 * _MiB:
        # v7x-class: 64 MiB VMEM per TC, 2 TCs/chip. Keep the single-step budget small so
        # medium W goes tiled and the "parallel" M axis shards across both TensorCores.
        return dict(tm=1024, tk=2048,
                    single_budget=8 * _MiB, single_vmem_limit=32 * _MiB,
                    tiled_vmem_limit=44 * _MiB)
    # v5e / v6e: 128 MiB VMEM, single TensorCore -> bigger tiles, bigger single-step budget.
    return dict(tm=1024, tk=4096,
                single_budget=48 * _MiB, single_vmem_limit=64 * _MiB,
                tiled_vmem_limit=80 * _MiB)


# ---------------------------------------------------------------------------
# Kernels
# ---------------------------------------------------------------------------
def _single_kernel(x_ref, w_ref, o_ref, *, transpose_w):
    # One MXU contraction over the whole (VMEM-resident) problem.
    # transpose_w=True : x (B, K) . w (M, K)  contracted on K  -> (B, M)  ("nt", MXU-native)
    # transpose_w=False: x (B, K) . w (K, M)  contracted on K  -> (B, M)
    lhs = x_ref[...]
    rhs = w_ref[...]
    if rhs.dtype != lhs.dtype:           # bf16 weight streaming: up-cast W, keep x in f32
        rhs = rhs.astype(lhs.dtype)
    contract = ((1,), (1,)) if transpose_w else ((1,), (0,))
    o_ref[...] = jax.lax.dot_general(
        lhs, rhs, dimension_numbers=(contract, ((), ())),
        preferred_element_type=jnp.float32,
    ).astype(o_ref.dtype)


def _tiled_kernel(x_ref, w_ref, o_ref, *, transpose_w):
    # Output block index is constant over the (last, "arbitrary") reduction axis and the
    # output is f32, so accumulate straight into o_ref — no scratch, no final copy.
    @pl.when(pl.program_id(1) == 0)
    def _():
        o_ref[...] = jnp.zeros_like(o_ref)

    lhs = x_ref[...]
    rhs = w_ref[...]
    if rhs.dtype != lhs.dtype:           # up-cast streamed weight tile (VPU, hidden under DMA)
        rhs = rhs.astype(lhs.dtype)
    contract = ((1,), (1,)) if transpose_w else ((1,), (0,))
    o_ref[...] += jax.lax.dot_general(
        lhs, rhs, dimension_numbers=(contract, ((), ())),
        preferred_element_type=jnp.float32,
    )


# ---------------------------------------------------------------------------
# Pallas wrappers
# ---------------------------------------------------------------------------
@functools.partial(jax.jit, static_argnames=("transpose_w", "out_dtype", "vmem_limit"))
def _matmul_single(x, w, *, transpose_w, out_dtype, vmem_limit):
    B, _ = x.shape
    M = w.shape[0] if transpose_w else w.shape[1]
    return pl.pallas_call(
        functools.partial(_single_kernel, transpose_w=transpose_w),
        out_shape=jax.ShapeDtypeStruct((B, M), out_dtype),
        # No grid / no BlockSpecs: whole arrays resident in VMEM, one invocation.
        compiler_params=pltpu.CompilerParams(vmem_limit_bytes=vmem_limit),
    )(x, w)


@functools.partial(
    jax.jit,
    static_argnames=("transpose_w", "m_true", "out_dtype", "tm", "tk", "vmem_limit"),
)
def _matmul_tiled(x, w, *, transpose_w, m_true, out_dtype, tm, tk, vmem_limit):
    B, K = x.shape
    if transpose_w:
        Mp, Kp = w.shape
    else:
        Kp, Mp = w.shape
    # W must be pre-padded ONCE at construction (no per-call HBM copy of the big operand).
    assert Mp % tm == 0 and Kp % tk == 0, (w.shape, tm, tk)
    assert K <= Kp and m_true <= Mp

    if K < Kp:
        x = jnp.pad(x, ((0, 0), (0, Kp - K)))   # x is tiny (B rows): pad is negligible

    if transpose_w:
        w_spec = pl.BlockSpec((tm, tk), lambda j, k: (j, k))
    else:
        w_spec = pl.BlockSpec((tk, tm), lambda j, k: (k, j))

    out = pl.pallas_call(
        functools.partial(_tiled_kernel, transpose_w=transpose_w),
        out_shape=jax.ShapeDtypeStruct((B, Mp), jnp.float32),
        grid_spec=pltpu.PrefetchScalarGridSpec(
            num_scalar_prefetch=0,
            grid=(Mp // tm, Kp // tk),            # reduction axis last
            in_specs=[
                # x block is tiny (B*tk*4 bytes, <0.2% of a W tile), so re-fetching it per
                # step is noise next to the 8–16 MiB streamed W tiles.
                pl.BlockSpec((B, tk), lambda j, k: (0, k)),
                w_spec,
            ],
            out_specs=pl.BlockSpec((B, tm), lambda j, k: (0, j)),   # resident over k
        ),
        compiler_params=pltpu.CompilerParams(
            dimension_semantics=("parallel", "arbitrary"),   # M axis shards across TCs (v7x)
            vmem_limit_bytes=vmem_limit,
        ),
    )(x, w)
    if m_true < Mp:
        out = out[:, :m_true]
    return out.astype(out_dtype)


# ---------------------------------------------------------------------------
# JAX port of deepinv.physics.LinearPhysics (forward-pass semantics).
# forward(x) = sensor_model(noise_model(A(x)))
# ---------------------------------------------------------------------------
class LinearPhysicsJAX:
    def __init__(
        self,
        A=lambda x: x,
        A_adjoint=lambda x: x,
        noise_model=lambda x: x,
        sensor_model=lambda x: x,
        max_iter=50,
        tol=0.001,
    ):
        self.forw = A
        self.adjoint = A_adjoint
        self.noise_model = noise_model
        self.sensor_model = sensor_model
        self.max_iter = max_iter
        self.tol = tol

    def A(self, x):
        return self.forw(x)

    def A_adjoint(self, y):
        return self.adjoint(y)

    def noise(self, x):
        return self.noise_model(x)

    def sensor(self, x):
        return self.sensor_model(x)

    def forward(self, x):
        # exact semantics of Physics.forward: y = sensor(noise(A(x)))
        return self.sensor(self.noise(self.A(x)))

    __call__ = forward

    # TODO(synk): A_dagger / prox_l2 / compute_norm / adjointness_test (iterative CG /
    # power-method solvers) are not part of the forward pass and are not ported here.


def make_dense_linear_physics(W, *, weight_dtype=None, force_tiled=False,
                              tile_m=None, tile_k=None):
    """LinearPhysics whose operator is y = W @ flatten(x), Pallas-backed.

    weight_dtype=jnp.bfloat16 streams W at half the HBM bytes (activations stay in the
    caller's dtype; W tiles are up-cast in-kernel; f32 MXU accumulation).
    """
    cfg = _tpu_config()
    W = jnp.asarray(W)
    m, n = W.shape
    Wk = W.astype(weight_dtype) if weight_dtype is not None else W

    # Tile sizes (clamped to the problem, multiples of 128 in both orientations).
    tm_f = _clamp_tile(tile_m or cfg["tm"], m)   # forward: output tiles over m
    tk_f = _clamp_tile(tile_k or cfg["tk"], n)   # forward: reduction tiles over n
    tm_a = _clamp_tile(tile_m or cfg["tm"], n)   # adjoint: output tiles over n
    tk_a = _clamp_tile(tile_k or cfg["tk"], m)   # adjoint: reduction tiles over m
    Mp_f, Kp_f = _round_up(m, tm_f), _round_up(n, tk_f)
    Mp_a, Kp_a = _round_up(n, tm_a), _round_up(m, tk_a)

    # Path decisions at construction (padded VMEM footprint; batch rows assumed <= 8,
    # activations assumed f32 — W dominates the footprint).
    fwd_single = (not force_tiled) and _single_footprint(
        (8, n), jnp.float32, (m, n), Wk.dtype, (8, m), jnp.float32) <= cfg["single_budget"]
    adj_single = (not force_tiled) and _single_footprint(
        (8, m), jnp.float32, (m, n), Wk.dtype, (8, n), jnp.float32) <= cfg["single_budget"]

    # Pad W ONCE (here, eagerly) for whichever tiled paths will be used; share the copy
    # between forward/adjoint when their padded shapes coincide.
    _w_pad_cache = {}

    def _padded_w(shape):
        if shape == tuple(Wk.shape):
            return Wk
        if shape not in _w_pad_cache:
            _w_pad_cache[shape] = jnp.pad(Wk, ((0, shape[0] - m), (0, shape[1] - n)))
        return _w_pad_cache[shape]

    W_fwd = Wk if fwd_single else _padded_w((Mp_f, Kp_f))
    W_adj = Wk if adj_single else _padded_w((Kp_a, Mp_a))

    def A(x):
        B = x.shape[0]
        x_flat = x.reshape(B, -1)                       # (B, n)
        assert x_flat.shape[1] == n
        out_dtype = jnp.dtype(x.dtype)
        if fwd_single:
            return _matmul_single(x_flat, W_fwd, transpose_w=True, out_dtype=out_dtype,
                                  vmem_limit=cfg["single_vmem_limit"])
        return _matmul_tiled(x_flat, W_fwd, transpose_w=True, m_true=m,
                             out_dtype=out_dtype, tm=tm_f, tk=tk_f,
                             vmem_limit=cfg["tiled_vmem_limit"])

    def A_adjoint(y):
        assert y.shape[1] == m
        out_dtype = jnp.dtype(y.dtype)
        if adj_single:
            return _matmul_single(y, W_adj, transpose_w=False, out_dtype=out_dtype,
                                  vmem_limit=cfg["single_vmem_limit"])
        return _matmul_tiled(y, W_adj, transpose_w=False, m_true=n,
                             out_dtype=out_dtype, tm=tm_a, tk=tk_a,
                             vmem_limit=cfg["tiled_vmem_limit"])

    return LinearPhysicsJAX(A=A, A_adjoint=A_adjoint)


if __name__ == "__main__":
    key = jax.random.PRNGKey(0)
    kx, kw, kx2, kw2 = jax.random.split(key, 4)

    # --- small problem: single-step resident path ---------------------------------
    B, C, H, Wd = 2, 4, 16, 16           # NCHW input
    n = C * H * Wd                       # 1024 input pixels
    m = 512                              # measurement dimension
    x = jax.random.normal(kx, (B, C, H, Wd), dtype=jnp.float32)
    Wmat = jax.random.normal(kw, (m, n), dtype=jnp.float32) / jnp.sqrt(n)

    physics = make_dense_linear_physics(Wmat)
    y = jax.block_until_ready(physics(x))          # sensor(noise(A(x)))
    y_ref = x.reshape(B, -1) @ Wmat.T
    assert y.shape == (B, m)
    assert jnp.max(jnp.abs(y - y_ref)) < 1e-4

    xt = jax.block_until_ready(physics.A_adjoint(y))
    xt_ref = y @ Wmat
    assert xt.shape == (B, n)
    assert jnp.max(jnp.abs(xt - xt_ref)) < 1e-3

    # --- tiled path with ragged (non-tile-multiple) dims: W padded once at construction
    C2, H2, W2 = 5, 10, 20               # n2 = 1000 (not a multiple of 128)
    n2 = C2 * H2 * W2
    m2 = 400                             # not a multiple of 128 either
    x2 = jax.random.normal(kx2, (B, C2, H2, W2), dtype=jnp.float32)
    Wmat2 = jax.random.normal(kw2, (m2, n2), dtype=jnp.float32) / jnp.sqrt(n2)

    physics_t = make_dense_linear_physics(Wmat2, force_tiled=True, tile_m=256, tile_k=256)
    y2 = jax.block_until_ready(physics_t(x2))
    y2_ref = x2.reshape(B, -1) @ Wmat2.T
    assert y2.shape == (B, m2)
    assert jnp.max(jnp.abs(y2 - y2_ref)) < 1e-3

    xt2 = jax.block_until_ready(physics_t.A_adjoint(y2))
    xt2_ref = y2 @ Wmat2
    assert xt2.shape == (B, n2)
    assert jnp.max(jnp.abs(xt2 - xt2_ref)) < 1e-3

    # --- bf16 weight streaming (half the W HBM bytes; activations stay f32) -------
    physics_bf16 = make_dense_linear_physics(Wmat, weight_dtype=jnp.bfloat16)
    y_bf16 = jax.block_until_ready(physics_bf16(x))
    assert y_bf16.dtype == x.dtype
    assert jnp.max(jnp.abs(y_bf16 - y_ref)) < 0.05

    print("KERNEL_OK")
</pallas_src>

<mosaic_0001>
module attributes {stable_mosaic.version = 11 : i64} {
  func.func @_single_kernel(%arg0: memref<2x1024xf32, #tpu.memory_space<vmem>>, %arg1: memref<512x1024xf32, #tpu.memory_space<vmem>>, %arg2: memref<2x512xf32, #tpu.memory_space<vmem>>) attributes {dimension_semantics = [], scalar_prefetch = 0 : i64, scratch_operands = 0 : i64, tpu.core_type = #tpu.core_type<tc>} {
    %c0 = arith.constant 0 : index
    %c0_0 = arith.constant 0 : index
    %0 = vector.load %arg0[%c0, %c0_0] : memref<2x1024xf32, #tpu.memory_space<vmem>>, vector<2x1024xf32>
    %c0_1 = arith.constant 0 : index
    %c0_2 = arith.constant 0 : index
    %1 = vector.load %arg1[%c0_1, %c0_2] : memref<512x1024xf32, #tpu.memory_space<vmem>>, vector<512x1024xf32>
    %cst = arith.constant dense<0.000000e+00> : vector<2x512xf32>
    %2 = tpu.matmul %0, %1, %cst {dimension_numbers = #tpu.dot_dimension_numbers<[1], [1], [0], [0], [0, 0, 1, 0], [], []>} : vector<2x1024xf32>, vector<512x1024xf32>, vector<2x512xf32> -> vector<2x512xf32>
    %c0_3 = arith.constant 0 : index
    %c0_4 = arith.constant 0 : index
    %3 = vector.load %arg2[%c0_3, %c0_4] : memref<2x512xf32, #tpu.memory_space<vmem>>, vector<2x512xf32>
    tpu.vector_store %arg2[%c0_3, %c0_4], %2 {strides = array<i32>} : memref<2x512xf32, #tpu.memory_space<vmem>>, vector<2x512xf32>,
    return
  }
}

</mosaic_0001>

<bundles_post_ra>
// kernel: _matmul_single.1
= control target key start
LH: loop header
LB: loop body
LE: loop exit
PB: predicated region body
PF: predicated region fallthrough
CT: control target
= control target key end

     0   :  { %7 = vsyncpa [#allocation3], 0  ;;  %s1913_s0 = inlined_call_operand.hbm [shape: f32[2,1024], index: 0, kind: input, shape index: {}]   ;;  %s1914_s1 = inlined_call_operand.hbm [shape: f32[512,1024], index: 1, kind: input, shape index: {}]   ;;  %s1915_s2 = inlined_call_operand.hbm [shape: f32[2,512], index: 2, kind: output, shape index: {}]  }
   0x1   :  { %8 = vsyncpa [#allocation6], 0 }
   0x2   :  { %9 = vsyncpa [#allocation4], 0  ;;  %s1807_s9 = smov [#allocation2]   ;;  %s1808_s11 = smov [#allocation5]  }
   0x3   :  { %s16_s10 = sshll.u32 %s1807_s9, 4  ;;  %s25_s12 = sshll.u32 %s1808_s11, 4  ;;  %s17_s10 = int_to_ptr.vmem [resolvable:$true] %s16_s10  ;;  %s1828_s12 = int_to_ptr.vmem [resolvable:$true] %s25_s12 }
   0x4   :  { %s1735_s15 = scalar_lea.hbm %s1913_s0, 256 }
   0x5   :  { %p1736_p0 = scmp.ne.s32.totalorder %s1913_s0, %s1735_s15  ;;  %p1739_p1 = scmp.lt.u32.totalorder %s1735_s15, %s1913_s0 }
   0x7   :  { %p1741_p2 = pnand %p1739_p1, %p1736_p0 }
   0x9   :  { %1744 = shalt.err (!%p1741_p2)
}
   0xa   :  { %s1745_s20 = scalar_lea.vmem %s17_s10, 256  ;;  %p1750_p4 = scmp.lt.s32.totalorder %s17_s10, %s17_s10 }
   0xb   :  { %p1746_p3 = scmp.ne.s32.totalorder %s17_s10, %s1745_s20  ;;  %p1751_p5 = scmp.lt.s32.totalorder %s1745_s20, %s1745_s20 }
   0xd   :  { %p1752_p6 = por %p1751_p5, %p1750_p4 }
   0xf   :  { %p1753_p7 = pnand %p1752_p6, %p1746_p3 }
  0x11   :  { %1756 = shalt.err (!%p1753_p7)
}
  0x12   :  { %19 = dma.hbm_to_vmem [thread:$0]  %s1913_s0, 256, %s17_s10, [#allocation3]  }
  0x13   :  { %s1757_s25 = scalar_lea.hbm %s1914_s1, 65536 }
  0x14   :  { %p1758_p8 = scmp.ne.s32.totalorder %s1914_s1, %s1757_s25  ;;  %p1761_p9 = scmp.lt.u32.totalorder %s1757_s25, %s1914_s1 }
  0x16   :  { %p1763_p10 = pnand %p1761_p9, %p1758_p8 }
  0x18   :  { %1766 = shalt.err (!%p1763_p10)
}
  0x19   :  { %s1767_s30 = scalar_lea.vmem %s1828_s12, 65536  ;;  %p1772_p12 = scmp.lt.s32.totalorder %s1828_s12, %s1828_s12 }
  0x1a   :  { %p1768_p11 = scmp.ne.s32.totalorder %s1828_s12, %s1767_s30  ;;  %p1773_p13 = scmp.lt.s32.totalorder %s1767_s30, %s1767_s30 }
  0x1c   :  { %p1774_p0 = por %p1773_p13, %p1772_p12 }
  0x1e   :  { %p1775_p1 = pnand %p1774_p0, %p1768_p11 }
  0x20   :  { %1778 = shalt.err (!%p1775_p1)
}
  0x21   :  { %s1809_s0 = smov 1024   ;;  %s1810_s3 = smov 64  }
  0x22   :  { %31 = dma.hbm_to_vmem [thread:$0]  %s1914_s1, 65536, %s1828_s12, [#allocation6], %s1809_s0, %s1809_s0, %s1810_s3  }
  0x23   :  { %1801 = dma.done.wait [#allocation3], 256  }
  0x24   :  { %1802 = vsyncadd [#allocation3], 4294967040 }
  0x25   :  { %1803 = dma.done.wait [#allocation6], 65536  }
  0x26   :  { %1804 = vsyncadd [#allocation6], 4294901760  ;;  %v41_v0 = vld [vmem:[#allocation5 + $0x8] sm:$0xff]  ;;  %v40_v5 = vld [vmem:[#allocation5] sm:$0xff]  ;;  %v1811_v62 = vmov 1983009808  }
  0x27   :  { %v49_v1 = vld [vmem:[#allocation5 + $0x48] sm:$0xff]  ;;  %v48_v6 = vld [vmem:[#allocation5 + $0x40] sm:$0xff]  ;;  %v556_v63 = vunpack.c.l.s4 %v1811_v62  ;;  %s1812_s1 = smov [#allocation7]  }
  0x28   :  { %v297_v2 = vld [vmem:[#allocation5 + $0x808] sm:$0xff]  ;;  %v1203_v3 = vpack.c.bf16 %v49_v1, %v41_v0  ;;  %v1205_v8 = vpack.c.bf16 %v48_v6, %v40_v5  ;;  %v296_v9 = vld [vmem:[#allocation5 + $0x800] sm:$0xff]  ;;  %v558_v0 = vlaneseq  ;;  %s1193_s6 = sshll.u32 %s1812_s1, 4  ;;  %s1194_s6 = int_to_ptr.vmem [resolvable:$true] %s1193_s6 }
  0x29   :  { %v305_v4 = vld [vmem:[#allocation5 + $0x848] sm:$0xff]  ;;  %v304_v10 = vld [vmem:[#allocation5 + $0x840] sm:$0xff]  ;;  %v557_v5 = vunpack.c.0.s8 %v556_v63  ;;  %s1779_s7 = scalar_lea.vmem %s1194_s6, 128  ;;  %p1784_p3 = scmp.lt.s32.totalorder %s1194_s6, %s1194_s6 }
  0x2a   :  { %v1459_v7 = vpack.c.bf16 %v305_v4, %v297_v2  ;;  %v57_v11 = vld [vmem:[#allocation5 + $0x88] sm:$0xff]  ;;  %1204 = vmatprep.subr.bf16.mxu0 %v1203_v3  ;;  %v1461_v12 = vpack.c.bf16 %v304_v10, %v296_v9  ;;  %v56_v18 = vld [vmem:[#allocation5 + $0x80] sm:$0xff]  ;;  %v559_v6 = vshrl.u32 %v558_v0, 7  ;;  %p1780_p2 = scmp.ne.s32.totalorder %s1194_s6, %s1779_s7  ;;  %p1785_p4 = scmp.lt.s32.totalorder %s1779_s7, %s1779_s7 }
  0x2b   :  { %v65_v13 = vld [vmem:[#allocation5 + $0xc8] sm:$0xff]  ;;  %1206 = vmatpush1.bf16.xpose.msra.mxu0 %v1205_v8  ;;  %v64_v19 = vld [vmem:[#allocation5 + $0xc0] sm:$0xff] }
  0x2c   :  { %v313_v14 = vld [vmem:[#allocation5 + $0x888] sm:$0xff]  ;;  %1460 = vmatprep.subr.bf16.mxu1 %v1459_v7  ;;  %v1207_v16 = vpack.c.bf16 %v65_v13, %v57_v11  ;;  %v312_v20 = vld [vmem:[#allocation5 + $0x880] sm:$0xff]  ;;  %v1209_v26 = vpack.c.bf16 %v64_v19, %v56_v18  ;;  %p1786_p5 = por %p1785_p4, %p1784_p3 }
  0x2d   :  { %v321_v15 = vld [vmem:[#allocation5 + $0x8c8] sm:$0xff]  ;;  %1462 = vmatpush1.bf16.xpose.msra.mxu1 %v1461_v12  ;;  %v320_v21 = vld [vmem:[#allocation5 + $0x8c0] sm:$0xff] }
  0x2e   :  { %v1463_v17 = vpack.c.bf16 %v321_v15, %v313_v14  ;;  %1208 = vmatprep.subr.bf16.mxu0 %v1207_v16  ;;  %v73_v22 = vld [vmem:[#allocation5 + $0x108] sm:$0xff]  ;;  %v1465_v27 = vpack.c.bf16 %v320_v21, %v312_v20  ;;  %v72_v30 = vld [vmem:[#allocation5 + $0x100] sm:$0xff]  ;;  %v1859_v15 = vsub.s32 %v557_v5, %v559_v6  ;;  %v1861_v20 = vld [vmem:[#allocation2] sm:$0xff]  ;;  %p1787_p6 = pnand %p1786_p5, %p1780_p2 }
  0x2f   :  { %v81_v23 = vld [vmem:[#allocation5 + $0x148] sm:$0xff]  ;;  %v80_v31 = vld [vmem:[#allocation5 + $0x140] sm:$0xff] }
  0x30   :  { %1464 = vmatprep.subr.bf16.mxu1 %v1463_v17  ;;  %v329_v24 = vld [vmem:[#allocation5 + $0x908] sm:$0xff]  ;;  %v1211_v28 = vpack.c.bf16 %v81_v23, %v73_v22  ;;  %v328_v32 = vld [vmem:[#allocation5 + $0x900] sm:$0xff]  ;;  %v1213_v38 = vpack.c.bf16 %v80_v31, %v72_v30  ;;  %v1865_v21 = vrot.slane %v1861_v20, %v1859_v15 }
  0x31   :  { %v337_v25 = vld [vmem:[#allocation5 + $0x948] sm:$0xff]  ;;  %v336_v33 = vld [vmem:[#allocation5 + $0x940] sm:$0xff] }
  0x32   :  { %v1467_v29 = vpack.c.bf16 %v337_v25, %v329_v24  ;;  %v89_v34 = vld [vmem:[#allocation5 + $0x188] sm:$0xff]  ;;  %v1469_v39 = vpack.c.bf16 %v336_v33, %v328_v32  ;;  %v88_v42 = vld [vmem:[#allocation5 + $0x180] sm:$0xff]  ;;  %v569_v25 = vcombine.high %v1865_v21, %v1865_v21 }
  0x33   :  { %1210 = vmatpush1.bf16.xpose.msra.mxu0 %v1209_v26  ;;  %v97_v35 = vld [vmem:[#allocation5 + $0x1c8] sm:$0xff]  ;;  %v96_v43 = vld [vmem:[#allocation5 + $0x1c0] sm:$0xff] }
  0x34   :  { %1212 = vmatprep.subr.bf16.mxu0 %v1211_v28  ;;  %v345_v36 = vld [vmem:[#allocation5 + $0x988] sm:$0xff]  ;;  %v1215_v40 = vpack.c.bf16 %v97_v35, %v89_v34  ;;  %v344_v44 = vld [vmem:[#allocation5 + $0x980] sm:$0xff]  ;;  %v1217_v50 = vpack.c.bf16 %v96_v43, %v88_v42  ;;  %660 = vmatprep.mubr.f32.mxu0 %v569_v25 }
  0x35   :  { %1466 = vmatpush1.bf16.xpose.msra.mxu1 %v1465_v27  ;;  %v353_v37 = vld [vmem:[#allocation5 + $0x9c8] sm:$0xff]  ;;  %v352_v45 = vld [vmem:[#allocation5 + $0x9c0] sm:$0xff]  ;;  %944 = vmatprep.mubr.f32.mxu1 %v569_v25 }
  0x36   :  { %1468 = vmatprep.subr.bf16.mxu1 %v1467_v29  ;;  %v1471_v41 = vpack.c.bf16 %v353_v37, %v345_v36  ;;  %v105_v46 = vld [vmem:[#allocation5 + $0x208] sm:$0xff]  ;;  %v1473_v51 = vpack.c.bf16 %v352_v45, %v344_v44  ;;  %v104_v54 = vld [vmem:[#allocation5 + $0x200] sm:$0xff] }
  0x37   :  { %v113_v47 = vld [vmem:[#allocation5 + $0x248] sm:$0xff]  ;;  %v112_v55 = vld [vmem:[#allocation5 + $0x240] sm:$0xff] }
  0x38   :  { %v361_v48 = vld [vmem:[#allocation5 + $0xa08] sm:$0xff]  ;;  %v1219_v52 = vpack.c.bf16 %v113_v47, %v105_v46  ;;  %v360_v56 = vld [vmem:[#allocation5 + $0xa00] sm:$0xff]  ;;  %v1221_v1 = vpack.c.bf16 %v112_v55, %v104_v54 }
  0x39   :  { %v369_v49 = vld [vmem:[#allocation5 + $0xa48] sm:$0xff]  ;;  %v368_v57 = vld [vmem:[#allocation5 + $0xa40] sm:$0xff] }
  0x3a   :  { %v1475_v53 = vpack.c.bf16 %v369_v49, %v361_v48  ;;  %v121_v58 = vld [vmem:[#allocation5 + $0x288] sm:$0xff]  ;;  %v1477_v2 = vpack.c.bf16 %v368_v57, %v360_v56  ;;  %v120_v7 = vld [vmem:[#allocation5 + $0x280] sm:$0xff] }
  0x3b   :  { %1214 = vmatpush1.bf16.xpose.msra.mxu0 %v1213_v38  ;;  %v129_v59 = vld [vmem:[#allocation5 + $0x2c8] sm:$0xff]  ;;  %v128_v8 = vld [vmem:[#allocation5 + $0x2c0] sm:$0xff] }
  0x3c   :  { %1216 = vmatprep.subr.bf16.mxu0 %v1215_v40  ;;  %v377_v60 = vld [vmem:[#allocation5 + $0xa88] sm:$0xff]  ;;  %v1223_v3 = vpack.c.bf16 %v129_v59, %v121_v58  ;;  %v376_v9 = vld [vmem:[#allocation5 + $0xa80] sm:$0xff]  ;;  %v1225_v16 = vpack.c.bf16 %v128_v8, %v120_v7 }
  0x3d   :  { %1470 = vmatpush1.bf16.xpose.msra.mxu1 %v1469_v39  ;;  %v385_v61 = vld [vmem:[#allocation5 + $0xac8] sm:$0xff]  ;;  %v384_v10 = vld [vmem:[#allocation5 + $0xac0] sm:$0xff] }
  0x3e   :  { %1472 = vmatprep.subr.bf16.mxu1 %v1471_v41  ;;  %v1479_v4 = vpack.c.bf16 %v385_v61, %v377_v60  ;;  %v137_v11 = vld [vmem:[#allocation5 + $0x308] sm:$0xff]  ;;  %v1481_v17 = vpack.c.bf16 %v384_v10, %v376_v9  ;;  %v136_v22 = vld [vmem:[#allocation5 + $0x300] sm:$0xff] }
  0x3f   :  { %v145_v12 = vld [vmem:[#allocation5 + $0x348] sm:$0xff]  ;;  %v144_v23 = vld [vmem:[#allocation5 + $0x340] sm:$0xff] }
  0x40   :  { %v393_v13 = vld [vmem:[#allocation5 + $0xb08] sm:$0xff]  ;;  %v1227_v18 = vpack.c.bf16 %v145_v12, %v137_v11  ;;  %v392_v24 = vld [vmem:[#allocation5 + $0xb00] sm:$0xff]  ;;  %v1229_v31 = vpack.c.bf16 %v144_v23, %v136_v22 }
  0x41   :  { %v401_v14 = vld [vmem:[#allocation5 + $0xb48] sm:$0xff]  ;;  %v400_v26 = vld [vmem:[#allocation5 + $0xb40] sm:$0xff] }
  0x42   :  { %v1483_v19 = vpack.c.bf16 %v401_v14, %v393_v13  ;;  %v153_v27 = vld [vmem:[#allocation5 + $0x388] sm:$0xff]  ;;  %v1485_v32 = vpack.c.bf16 %v400_v26, %v392_v24  ;;  %v152_v35 = vld [vmem:[#allocation5 + $0x380] sm:$0xff] }
  0x43   :  { %1218 = vmatpush1.bf16.xpose.msra.mxu0 %v1217_v50  ;;  %v161_v28 = vld [vmem:[#allocation5 + $0x3c8] sm:$0xff]  ;;  %v160_v36 = vld [vmem:[#allocation5 + $0x3c0] sm:$0xff] }
  0x44   :  { %1220 = vmatprep.subr.bf16.mxu0 %v1219_v52  ;;  %v409_v29 = vld [vmem:[#allocation5 + $0xb88] sm:$0xff]  ;;  %v1231_v33 = vpack.c.bf16 %v161_v28, %v153_v27  ;;  %v408_v37 = vld [vmem:[#allocation5 + $0xb80] sm:$0xff]  ;;  %v1233_v43 = vpack.c.bf16 %v160_v36, %v152_v35 }
  0x45   :  { %1474 = vmatpush1.bf16.xpose.msra.mxu1 %v1473_v51  ;;  %v417_v30 = vld [vmem:[#allocation5 + $0xbc8] sm:$0xff]  ;;  %v416_v38 = vld [vmem:[#allocation5 + $0xbc0] sm:$0xff] }
  0x46   :  { %1476 = vmatprep.subr.bf16.mxu1 %v1475_v53  ;;  %v1487_v34 = vpack.c.bf16 %v417_v30, %v409_v29  ;;  %v169_v39 = vld [vmem:[#allocation5 + $0x408] sm:$0xff]  ;;  %v1489_v44 = vpack.c.bf16 %v416_v38, %v408_v37  ;;  %v168_v47 = vld [vmem:[#allocation5 + $0x400] sm:$0xff] }
  0x47   :  { %v177_v40 = vld [vmem:[#allocation5 + $0x448] sm:$0xff]  ;;  %v176_v48 = vld [vmem:[#allocation5 + $0x440] sm:$0xff] }
  0x48   :  { %v425_v41 = vld [vmem:[#allocation5 + $0xc08] sm:$0xff]  ;;  %v1235_v45 = vpack.c.bf16 %v177_v40, %v169_v39  ;;  %v424_v49 = vld [vmem:[#allocation5 + $0xc00] sm:$0xff]  ;;  %v1237_v55 = vpack.c.bf16 %v176_v48, %v168_v47 }
  0x49   :  { %v433_v42 = vld [vmem:[#allocation5 + $0xc48] sm:$0xff]  ;;  %v432_v50 = vld [vmem:[#allocation5 + $0xc40] sm:$0xff] }
  0x4a   :  { %v1491_v46 = vpack.c.bf16 %v433_v42, %v425_v41  ;;  %v185_v51 = vld [vmem:[#allocation5 + $0x488] sm:$0xff]  ;;  %v1493_v56 = vpack.c.bf16 %v432_v50, %v424_v49  ;;  %v184_v59 = vld [vmem:[#allocation5 + $0x480] sm:$0xff] }
  0x4b   :  { %1222 = vmatpush1.bf16.xpose.msra.mxu0 %v1221_v1  ;;  %v193_v52 = vld [vmem:[#allocation5 + $0x4c8] sm:$0xff]  ;;  %v192_v60 = vld [vmem:[#allocation5 + $0x4c0] sm:$0xff] }
  0x4c   :  { %1224 = vmatprep.subr.bf16.mxu0 %v1223_v3  ;;  %v441_v53 = vld [vmem:[#allocation5 + $0xc88] sm:$0xff]  ;;  %v1239_v57 = vpack.c.bf16 %v193_v52, %v185_v51  ;;  %v440_v61 = vld [vmem:[#allocation5 + $0xc80] sm:$0xff]  ;;  %v1241_v3 = vpack.c.bf16 %v192_v60, %v184_v59 }
  0x4d   :  { %1478 = vmatpush1.bf16.xpose.msra.mxu1 %v1477_v2  ;;  %v449_v54 = vld [vmem:[#allocation5 + $0xcc8] sm:$0xff]  ;;  %v448_v62 = vld [vmem:[#allocation5 + $0xcc0] sm:$0xff] }
  0x4e   :  { %1480 = vmatprep.subr.bf16.mxu1 %v1479_v4  ;;  %v1495_v58 = vpack.c.bf16 %v449_v54, %v441_v53  ;;  %v201_v63 = vld [vmem:[#allocation5 + $0x508] sm:$0xff]  ;;  %v1497_v4 = vpack.c.bf16 %v448_v62, %v440_v61  ;;  %v200_v7 = vld [vmem:[#allocation5 + $0x500] sm:$0xff] }
  0x4f   :  { %v209_v0 = vld [vmem:[#allocation5 + $0x548] sm:$0xff]  ;;  %v208_v8 = vld [vmem:[#allocation5 + $0x540] sm:$0xff] }
  0x50   :  { %v457_v1 = vld [vmem:[#allocation5 + $0xd08] sm:$0xff]  ;;  %v1243_v5 = vpack.c.bf16 %v209_v0, %v201_v63  ;;  %v456_v9 = vld [vmem:[#allocation5 + $0xd00] sm:$0xff] }
  0x51   :  { %v465_v2 = vld [vmem:[#allocation5 + $0xd48] sm:$0xff]  ;;  %v464_v10 = vld [vmem:[#allocation5 + $0xd40] sm:$0xff] }
  0x52   :  { %v1499_v6 = vpack.c.bf16 %v465_v2, %v457_v1  ;;  %v217_v11 = vld [vmem:[#allocation5 + $0x588] sm:$0xff]  ;;  %v216_v22 = vld [vmem:[#allocation5 + $0x580] sm:$0xff] }
  0x53   :  { %1226 = vmatpush1.bf16.xpose.msra.mxu0 %v1225_v16  ;;  %v225_v12 = vld [vmem:[#allocation5 + $0x5c8] sm:$0xff]  ;;  %v1245_v16 = vpack.c.bf16 %v208_v8, %v200_v7  ;;  %v224_v23 = vld [vmem:[#allocation5 + $0x5c0] sm:$0xff] }
  0x54   :  { %1228 = vmatprep.subr.bf16.mxu0 %v1227_v18  ;;  %v473_v13 = vld [vmem:[#allocation5 + $0xd88] sm:$0xff]  ;;  %v1247_v18 = vpack.c.bf16 %v225_v12, %v217_v11  ;;  %v472_v24 = vld [vmem:[#allocation5 + $0xd80] sm:$0xff]  ;;  %v1249_v30 = vpack.c.bf16 %v224_v23, %v216_v22  ;;  %v51_v11 = vld [vmem:[#allocation5 + $0x58] sm:$0xff] }
  0x55   :  { %1482 = vmatpush1.bf16.xpose.msra.mxu1 %v1481_v17  ;;  %v481_v14 = vld [vmem:[#allocation5 + $0xdc8] sm:$0xff]  ;;  %v1501_v17 = vpack.c.bf16 %v464_v10, %v456_v9  ;;  %v480_v25 = vld [vmem:[#allocation5 + $0xdc0] sm:$0xff]  ;;  %v43_v10 = vld [vmem:[#allocation5 + $0x18] sm:$0xff] }
  0x56   :  { %1484 = vmatprep.subr.bf16.mxu1 %v1483_v19  ;;  %v1503_v19 = vpack.c.bf16 %v481_v14, %v473_v13  ;;  %v233_v26 = vld [vmem:[#allocation5 + $0x608] sm:$0xff]  ;;  %v240_v35 = vld [vmem:[#allocation5 + $0x640] sm:$0xff]  ;;  %v299_v12 = vld [vmem:[#allocation5 + $0x818] sm:$0xff] }
  0x57   :  { %v241_v27 = vld [vmem:[#allocation5 + $0x648] sm:$0xff]  ;;  %v488_v36 = vld [vmem:[#allocation5 + $0xe00] sm:$0xff]  ;;  %v307_v13 = vld [vmem:[#allocation5 + $0x858] sm:$0xff] }
  0x58   :  { %v489_v28 = vld [vmem:[#allocation5 + $0xe08] sm:$0xff]  ;;  %v496_v37 = vld [vmem:[#allocation5 + $0xe40] sm:$0xff]  ;;  %v42_v22 = vld [vmem:[#allocation5 + $0x10] sm:$0xff] }
  0x59   :  { %v497_v29 = vld [vmem:[#allocation5 + $0xe48] sm:$0xff]  ;;  %v256_v47 = vld [vmem:[#allocation5 + $0x6c0] sm:$0xff]  ;;  %v50_v23 = vld [vmem:[#allocation5 + $0x50] sm:$0xff] }
  0x5a   :  { %v249_v38 = vld [vmem:[#allocation5 + $0x688] sm:$0xff]  ;;  %v504_v48 = vld [vmem:[#allocation5 + $0xe80] sm:$0xff] }
  0x5b   :  { %1230 = vmatpush1.bf16.xpose.msra.mxu0 %v1229_v31  ;;  %v1505_v31 = vpack.c.bf16 %v480_v25, %v472_v24  ;;  %v257_v39 = vld [vmem:[#allocation5 + $0x6c8] sm:$0xff]  ;;  %v512_v49 = vld [vmem:[#allocation5 + $0xec0] sm:$0xff]  ;;  %v298_v24 = vld [vmem:[#allocation5 + $0x810] sm:$0xff] }
  0x5c   :  { %1232 = vmatprep.subr.bf16.mxu0 %v1231_v33  ;;  %v1507_v33 = vpack.c.bf16 %v497_v29, %v489_v28  ;;  %v505_v40 = vld [vmem:[#allocation5 + $0xe88] sm:$0xff]  ;;  %v272_v59 = vld [vmem:[#allocation5 + $0x740] sm:$0xff]  ;;  %v306_v25 = vld [vmem:[#allocation5 + $0x850] sm:$0xff] }
  0x5d   :  { %1486 = vmatpush1.bf16.xpose.msra.mxu1 %v1485_v32  ;;  %v1251_v32 = vpack.c.bf16 %v241_v27, %v233_v26  ;;  %v513_v41 = vld [vmem:[#allocation5 + $0xec8] sm:$0xff]  ;;  %v520_v60 = vld [vmem:[#allocation5 + $0xf00] sm:$0xff]  ;;  %v59_v26 = vld [vmem:[#allocation5 + $0x98] sm:$0xff] }
  0x5e   :  { %1488 = vmatprep.subr.bf16.mxu1 %v1487_v34  ;;  %v232_v34 = vld [vmem:[#allocation5 + $0x600] sm:$0xff]  ;;  %v265_v50 = vld [vmem:[#allocation5 + $0x708] sm:$0xff]  ;;  %v67_v27 = vld [vmem:[#allocation5 + $0xd8] sm:$0xff] }
  0x5f   :  { %v1253_v42 = vpack.c.bf16 %v240_v35, %v232_v34  ;;  %v273_v51 = vld [vmem:[#allocation5 + $0x748] sm:$0xff]  ;;  %v528_v61 = vld [vmem:[#allocation5 + $0xf40] sm:$0xff]  ;;  %v315_v29 = vld [vmem:[#allocation5 + $0x898] sm:$0xff] }
  0x60   :  { %v521_v52 = vld [vmem:[#allocation5 + $0xf08] sm:$0xff]  ;;  %v288_v7 = vld [vmem:[#allocation5 + $0x7c0] sm:$0xff]  ;;  %v58_v35 = vld [vmem:[#allocation5 + $0x90] sm:$0xff] }
  0x61   :  { %v529_v53 = vld [vmem:[#allocation5 + $0xf48] sm:$0xff]  ;;  %v536_v8 = vld [vmem:[#allocation5 + $0xf80] sm:$0xff] }
  0x62   :  { %v281_v62 = vld [vmem:[#allocation5 + $0x788] sm:$0xff]  ;;  %v544_v9 = vld [vmem:[#allocation5 + $0xfc0] sm:$0xff] }
  0x63   :  { %1234 = vmatpush1.bf16.xpose.msra.mxu0 %v1233_v43  ;;  %v1509_v43 = vpack.c.bf16 %v496_v37, %v488_v36  ;;  %v289_v63 = vld [vmem:[#allocation5 + $0x7c8] sm:$0xff]  ;;  %v66_v36 = vld [vmem:[#allocation5 + $0xd0] sm:$0xff] }
  0x64   :  { %1236 = vmatprep.subr.bf16.mxu0 %v1235_v45  ;;  %v1511_v45 = vpack.c.bf16 %v513_v41, %v505_v40  ;;  %v537_v0 = vld [vmem:[#allocation5 + $0xf88] sm:$0xff]  ;;  %v314_v37 = vld [vmem:[#allocation5 + $0x890] sm:$0xff]  ;;  %v83_v40 = vld [vmem:[#allocation5 + $0x158] sm:$0xff] }
  0x65   :  { %1490 = vmatpush1.bf16.xpose.msra.mxu1 %v1489_v44  ;;  %v1255_v44 = vpack.c.bf16 %v257_v39, %v249_v38  ;;  %v545_v1 = vld [vmem:[#allocation5 + $0xfc8] sm:$0xff]  ;;  %v322_v38 = vld [vmem:[#allocation5 + $0x8d0] sm:$0xff]  ;;  %v75_v39 = vld [vmem:[#allocation5 + $0x118] sm:$0xff] }
  0x66   :  { %1492 = vmatprep.subr.bf16.mxu1 %v1491_v46  ;;  %v248_v46 = vld [vmem:[#allocation5 + $0x680] sm:$0xff]  ;;  %v331_v41 = vld [vmem:[#allocation5 + $0x918] sm:$0xff] }
  0x67   :  { %v1257_v54 = vpack.c.bf16 %v256_v47, %v248_v46  ;;  %v82_v47 = vld [vmem:[#allocation5 + $0x150] sm:$0xff] }
  0x6b   :  { %1238 = vmatpush1.bf16.xpose.msra.mxu0 %v1237_v55  ;;  %v1513_v55 = vpack.c.bf16 %v512_v49, %v504_v48  ;;  %v330_v48 = vld [vmem:[#allocation5 + $0x910] sm:$0xff] }
  0x6c   :  { %1240 = vmatprep.subr.bf16.mxu0 %v1239_v57  ;;  %v1515_v57 = vpack.c.bf16 %v529_v53, %v521_v52  ;;  %v338_v49 = vld [vmem:[#allocation5 + $0x950] sm:$0xff]  ;;  %v347_v52 = vld [vmem:[#allocation5 + $0x998] sm:$0xff] }
  0x6d   :  { %1494 = vmatpush1.bf16.xpose.msra.mxu1 %v1493_v56  ;;  %v1259_v56 = vpack.c.bf16 %v273_v51, %v265_v50  ;;  %v91_v50 = vld [vmem:[#allocation5 + $0x198] sm:$0xff] }
  0x6e   :  { %1496 = vmatprep.subr.bf16.mxu1 %v1495_v58  ;;  %v264_v58 = vld [vmem:[#allocation5 + $0x700] sm:$0xff]  ;;  %v99_v51 = vld [vmem:[#allocation5 + $0x1d8] sm:$0xff] }
  0x6f   :  { %v1261_v2 = vpack.c.bf16 %v272_v59, %v264_v58  ;;  %v355_v53 = vld [vmem:[#allocation5 + $0x9d8] sm:$0xff]  ;;  %v90_v58 = vld [vmem:[#allocation5 + $0x190] sm:$0xff] }
  0x70   :  { %v98_v59 = vld [vmem:[#allocation5 + $0x1d0] sm:$0xff] }
  0x73   :  { %1242 = vmatpush1.bf16.xpose.msra.mxu0 %v1241_v3  ;;  %v1517_v3 = vpack.c.bf16 %v528_v61, %v520_v60  ;;  %v346_v60 = vld [vmem:[#allocation5 + $0x990] sm:$0xff] }
  0x74   :  { %1244 = vmatprep.subr.bf16.mxu0 %v1243_v5  ;;  %v1519_v5 = vpack.c.bf16 %v545_v1, %v537_v0  ;;  %v354_v61 = vld [vmem:[#allocation5 + $0x9d0] sm:$0xff]  ;;  %v363_v0 = vld [vmem:[#allocation5 + $0xa18] sm:$0xff] }
  0x75   :  { %1498 = vmatpush1.bf16.xpose.msra.mxu1 %v1497_v4  ;;  %v1263_v4 = vpack.c.bf16 %v289_v63, %v281_v62  ;;  %v107_v62 = vld [vmem:[#allocation5 + $0x218] sm:$0xff] }
  0x76   :  { %1500 = vmatprep.subr.bf16.mxu1 %v1499_v6  ;;  %v280_v6 = vld [vmem:[#allocation5 + $0x780] sm:$0xff]  ;;  %v115_v63 = vld [vmem:[#allocation5 + $0x258] sm:$0xff] }
  0x77   :  { %v1265_v14 = vpack.c.bf16 %v288_v7, %v280_v6  ;;  %v371_v1 = vld [vmem:[#allocation5 + $0xa58] sm:$0xff]  ;;  %v106_v6 = vld [vmem:[#allocation5 + $0x210] sm:$0xff] }
  0x78   :  { %v114_v7 = vld [vmem:[#allocation5 + $0x250] sm:$0xff] }
  0x7b   :  { %1246 = vmatpush1.bf16.xpose.msra.mxu0 %v1245_v16  ;;  %v1521_v16 = vpack.c.bf16 %v544_v9, %v536_v8  ;;  %v362_v8 = vld [vmem:[#allocation5 + $0xa10] sm:$0xff] }
  0x7c   :  { %1248 = vmatprep.subr.bf16.mxu0 %v1247_v18  ;;  %v554_v18 = vcombine.high %v1861_v20, %v1861_v20  ;;  %v370_v9 = vld [vmem:[#allocation5 + $0xa50] sm:$0xff] }
  0x7d   :  { %1502 = vmatpush1.bf16.xpose.msra.mxu1 %v1501_v17  ;;  %v1267_v17 = vpack.c.bf16 %v51_v11, %v43_v10  ;;  %v123_v10 = vld [vmem:[#allocation5 + $0x298] sm:$0xff] }
  0x7e   :  { %1504 = vmatprep.subr.bf16.mxu1 %v1503_v19  ;;  %v1523_v19 = vpack.c.bf16 %v307_v13, %v299_v12  ;;  %v1872_v28 = vrot.slane %v554_v18, %v1859_v15  ;;  %v131_v11 = vld [vmem:[#allocation5 + $0x2d8] sm:$0xff] }
  0x7f   :  { %v379_v12 = vld [vmem:[#allocation5 + $0xa98] sm:$0xff] }
  0x80   :  { %v570_v34 = vcombine.high %v1872_v28, %v1872_v28  ;;  %v387_v13 = vld [vmem:[#allocation5 + $0xad8] sm:$0xff] }
  0x81   :  { %v1543_v18 = vpack.c.bf16 %v387_v13, %v379_v12 }
  0x83   :  { %1250 = vmatpush1.bf16.xpose.msra.mxu0 %v1249_v30  ;;  %v323_v30 = vld [vmem:[#allocation5 + $0x8d8] sm:$0xff] }
  0x84   :  { %1252 = vmatprep.subr.bf16.mxu0 %v1251_v32  ;;  %v1525_v32 = vpack.c.bf16 %v306_v25, %v298_v24  ;;  %v1527_v20 = vpack.c.bf16 %v323_v30, %v315_v29  ;;  %v386_v24 = vld [vmem:[#allocation5 + $0xad0] sm:$0xff]  ;;  %v139_v25 = vld [vmem:[#allocation5 + $0x318] sm:$0xff] }
  0x85   :  { %1506 = vmatpush1.bf16.xpose.msra.mxu1 %v1505_v31  ;;  %v1269_v31 = vpack.c.bf16 %v50_v23, %v42_v22  ;;  %v130_v22 = vld [vmem:[#allocation5 + $0x2d0] sm:$0xff]  ;;  %v403_v29 = vld [vmem:[#allocation5 + $0xb58] sm:$0xff] }
  0x86   :  { %1508 = vmatprep.subr.bf16.mxu1 %v1507_v33  ;;  %v1271_v33 = vpack.c.bf16 %v67_v27, %v59_v26  ;;  %v378_v23 = vld [vmem:[#allocation5 + $0xa90] sm:$0xff]  ;;  %v147_v26 = vld [vmem:[#allocation5 + $0x358] sm:$0xff] }
  0x87   :  { %v395_v27 = vld [vmem:[#allocation5 + $0xb18] sm:$0xff] }
  0x8b   :  { %1254 = vmatpush1.bf16.xpose.msra.mxu0 %v1253_v42  ;;  %v339_v42 = vld [vmem:[#allocation5 + $0x958] sm:$0xff] }
  0x8c   :  { %1256 = vmatprep.subr.bf16.mxu0 %v1255_v44  ;;  %v1529_v44 = vpack.c.bf16 %v322_v38, %v314_v37  ;;  %v1531_v46 = vpack.c.bf16 %v339_v42, %v331_v41  ;;  %v155_v37 = vld [vmem:[#allocation5 + $0x398] sm:$0xff] }
  0x8d   :  { %1510 = vmatpush1.bf16.xpose.msra.mxu1 %v1509_v43  ;;  %v1273_v43 = vpack.c.bf16 %v66_v36, %v58_v35  ;;  %v394_v35 = vld [vmem:[#allocation5 + $0xb10] sm:$0xff]  ;;  %v163_v38 = vld [vmem:[#allocation5 + $0x3d8] sm:$0xff] }
  0x8e   :  { %1512 = vmatprep.subr.bf16.mxu1 %v1511_v45  ;;  %v1275_v45 = vpack.c.bf16 %v83_v40, %v75_v39  ;;  %v402_v36 = vld [vmem:[#allocation5 + $0xb50] sm:$0xff]  ;;  %v411_v39 = vld [vmem:[#allocation5 + $0xb98] sm:$0xff] }
  0x8f   :  { %v419_v40 = vld [vmem:[#allocation5 + $0xbd8] sm:$0xff]  ;;  %v1549_v42 = vpack.c.bf16 %v402_v36, %v394_v35 }
  0x90   :  { %v235_v35 = vld [vmem:[#allocation5 + $0x618] sm:$0xff] }
  0x91   :  { %v243_v36 = vld [vmem:[#allocation5 + $0x658] sm:$0xff] }
  0x93   :  { %1258 = vmatpush1.bf16.xpose.msra.mxu0 %v1257_v54 }
  0x94   :  { %1260 = vmatprep.subr.bf16.mxu0 %v1259_v56  ;;  %v1279_v56 = vpack.c.bf16 %v99_v51, %v91_v50  ;;  %v427_v50 = vld [vmem:[#allocation5 + $0xc18] sm:$0xff] }
  0x95   :  { %1514 = vmatpush1.bf16.xpose.msra.mxu1 %v1513_v55  ;;  %v1533_v55 = vpack.c.bf16 %v338_v49, %v330_v48  ;;  %v171_v48 = vld [vmem:[#allocation5 + $0x418] sm:$0xff] }
  0x96   :  { %1516 = vmatprep.subr.bf16.mxu1 %v1515_v57  ;;  %v1535_v57 = vpack.c.bf16 %v355_v53, %v347_v52  ;;  %v179_v49 = vld [vmem:[#allocation5 + $0x458] sm:$0xff] }
  0x97   :  { %v435_v51 = vld [vmem:[#allocation5 + $0xc58] sm:$0xff] }
  0x9b   :  { %1262 = vmatpush1.bf16.xpose.msra.mxu0 %v1261_v2  ;;  %v1281_v2 = vpack.c.bf16 %v98_v59, %v90_v58  ;;  %v426_v58 = vld [vmem:[#allocation5 + $0xc10] sm:$0xff] }
  0x9c   :  { %1264 = vmatprep.subr.bf16.mxu0 %v1263_v4  ;;  %v1283_v4 = vpack.c.bf16 %v115_v63, %v107_v62  ;;  %v434_v59 = vld [vmem:[#allocation5 + $0xc50] sm:$0xff]  ;;  %v443_v62 = vld [vmem:[#allocation5 + $0xc98] sm:$0xff] }
  0x9d   :  { %1518 = vmatpush1.bf16.xpose.msra.mxu1 %v1517_v3  ;;  %v1537_v3 = vpack.c.bf16 %v354_v61, %v346_v60  ;;  %v187_v60 = vld [vmem:[#allocation5 + $0x498] sm:$0xff] }
  0x9e   :  { %1520 = vmatprep.subr.bf16.mxu1 %v1519_v5  ;;  %v1539_v5 = vpack.c.bf16 %v371_v1, %v363_v0  ;;  %v195_v61 = vld [vmem:[#allocation5 + $0x4d8] sm:$0xff]  ;;  %v1557_v1 = vpack.c.bf16 %v434_v59, %v426_v58 }
  0x9f   :  { %v451_v63 = vld [vmem:[#allocation5 + $0xcd8] sm:$0xff] }
  0xa0   :  { %v267_v58 = vld [vmem:[#allocation5 + $0x718] sm:$0xff] }
  0xa1   :  { %v275_v59 = vld [vmem:[#allocation5 + $0x758] sm:$0xff] }
  0xa3   :  { %1266 = vmatpush1.bf16.xpose.msra.mxu0 %v1265_v14  ;;  %v1285_v14 = vpack.c.bf16 %v114_v7, %v106_v6  ;;  %v442_v6 = vld [vmem:[#allocation5 + $0xc90] sm:$0xff] }
  0xa4   :  { %1268 = vmatprep.subr.bf16.mxu0 %v1267_v17  ;;  %v1287_v17 = vpack.c.bf16 %v131_v11, %v123_v10  ;;  %v450_v7 = vld [vmem:[#allocation5 + $0xcd0] sm:$0xff]  ;;  %v459_v10 = vld [vmem:[#allocation5 + $0xd18] sm:$0xff] }
  0xa5   :  { %1522 = vmatpush1.bf16.xpose.msra.mxu1 %v1521_v16  ;;  %v1541_v16 = vpack.c.bf16 %v370_v9, %v362_v8  ;;  %v203_v8 = vld [vmem:[#allocation5 + $0x518] sm:$0xff]  ;;  %v1561_v13 = vpack.c.bf16 %v450_v7, %v442_v6 }
  0xa6   :  { %1524 = vmatprep.subr.bf16.mxu1 %v1523_v19  ;;  %v122_v19 = vld [vmem:[#allocation5 + $0x290] sm:$0xff]  ;;  %v211_v9 = vld [vmem:[#allocation5 + $0x558] sm:$0xff] }
  0xa7   :  { %v1289_v30 = vpack.c.bf16 %v130_v22, %v122_v19  ;;  %v467_v11 = vld [vmem:[#allocation5 + $0xd58] sm:$0xff]  ;;  %v458_v19 = vld [vmem:[#allocation5 + $0xd10] sm:$0xff] }
  0xa8   :  { %v466_v22 = vld [vmem:[#allocation5 + $0xd50] sm:$0xff]  ;;  %v283_v6 = vld [vmem:[#allocation5 + $0x798] sm:$0xff] }
  0xa9   :  { %v291_v7 = vld [vmem:[#allocation5 + $0x7d8] sm:$0xff] }
  0xaa   :  { %661 = vmatmul.mubr.f32.vlgmr.msra.gmra.mrb[0].mxu0 %v1865_v21 }
  0xab   :  { %1270 = vmatpush1.bf16.xpose.msra.mxu0 %v1269_v31  ;;  %731 = vmatprep.mubr.f32.mxu0 %v570_v34  ;;  %v1545_v31 = vpack.c.bf16 %v386_v24, %v378_v23  ;;  %v219_v23 = vld [vmem:[#allocation5 + $0x598] sm:$0xff] }
  0xac   :  { %945 = vmatmul.mubr.f32.vlgmr.msra.gmra.mrb[0].mxu1 %v1865_v21  ;;  %1272 = vmatprep.subr.bf16.mxu0 %v1271_v33  ;;  %v74_v21 = vld [vmem:[#allocation5 + $0x110] sm:$0xff]  ;;  %v1547_v33 = vpack.c.bf16 %v403_v29, %v395_v27  ;;  %v227_v24 = vld [vmem:[#allocation5 + $0x5d8] sm:$0xff]  ;;  %v1565_v29 = vpack.c.bf16 %v466_v22, %v458_v19  ;;  %v45_v19 = vld [vmem:[#allocation5 + $0x28] sm:$0xff] }
  0xad   :  { %1526 = vmatpush1.bf16.xpose.msra.mxu1 %v1525_v32  ;;  %1015 = vmatprep.mubr.f32.mxu1 %v570_v34  ;;  %v1277_v54 = vpack.c.bf16 %v82_v47, %v74_v21  ;;  %v1291_v32 = vpack.c.bf16 %v147_v26, %v139_v25  ;;  %v146_v34 = vld [vmem:[#allocation5 + $0x350] sm:$0xff]  ;;  %v475_v25 = vld [vmem:[#allocation5 + $0xd98] sm:$0xff]  ;;  %v53_v22 = vld [vmem:[#allocation5 + $0x68] sm:$0xff] }
  0xae   :  { %1528 = vmatprep.subr.bf16.mxu1 %v1527_v20  ;;  %v138_v20 = vld [vmem:[#allocation5 + $0x310] sm:$0xff]  ;;  %v483_v26 = vld [vmem:[#allocation5 + $0xdd8] sm:$0xff] }
  0xaf   :  { %v1293_v41 = vpack.c.bf16 %v146_v34, %v138_v20  ;;  %v410_v21 = vld [vmem:[#allocation5 + $0xb90] sm:$0xff] }
  0xb0   :  { %v418_v47 = vld [vmem:[#allocation5 + $0xbd0] sm:$0xff] }
  0xb1   :  { %v1553_v53 = vpack.c.bf16 %v418_v47, %v410_v21  ;;  %v474_v20 = vld [vmem:[#allocation5 + $0xd90] sm:$0xff]  ;;  %v251_v21 = vld [vmem:[#allocation5 + $0x698] sm:$0xff] }
  0xb2   :  { %v482_v34 = vld [vmem:[#allocation5 + $0xdd0] sm:$0xff]  ;;  %v259_v47 = vld [vmem:[#allocation5 + $0x6d8] sm:$0xff] }
  0xb3   :  { %1274 = vmatpush1.bf16.xpose.msra.mxu0 %v1273_v43  ;;  %v1295_v43 = vpack.c.bf16 %v163_v38, %v155_v37  ;;  %v491_v37 = vld [vmem:[#allocation5 + $0xe18] sm:$0xff] }
  0xb4   :  { %1276 = vmatprep.subr.bf16.mxu0 %v1275_v45  ;;  %v154_v45 = vld [vmem:[#allocation5 + $0x390] sm:$0xff]  ;;  %v499_v38 = vld [vmem:[#allocation5 + $0xe58] sm:$0xff] }
  0xb5   :  { %1530 = vmatpush1.bf16.xpose.msra.mxu1 %v1529_v44  ;;  %v1551_v44 = vpack.c.bf16 %v419_v40, %v411_v39  ;;  %v1569_v40 = vpack.c.bf16 %v482_v34, %v474_v20  ;;  %v308_v20 = vld [vmem:[#allocation5 + $0x860] sm:$0xff]  ;;  %v61_v34 = vld [vmem:[#allocation5 + $0xa8] sm:$0xff] }
  0xb6   :  { %1532 = vmatprep.subr.bf16.mxu1 %v1531_v46  ;;  %v162_v46 = vld [vmem:[#allocation5 + $0x3d0] sm:$0xff] }
  0xb7   :  { %v1297_v52 = vpack.c.bf16 %v162_v46, %v154_v45  ;;  %v490_v45 = vld [vmem:[#allocation5 + $0xe10] sm:$0xff] }
  0xb8   :  { %v498_v46 = vld [vmem:[#allocation5 + $0xe50] sm:$0xff] }
  0xbb   :  { %1278 = vmatpush1.bf16.xpose.msra.mxu0 %v1277_v54  ;;  %v1299_v54 = vpack.c.bf16 %v179_v49, %v171_v48  ;;  %v507_v48 = vld [vmem:[#allocation5 + $0xe98] sm:$0xff] }
  0xbc   :  { %1280 = vmatprep.subr.bf16.mxu0 %v1279_v56  ;;  %v170_v56 = vld [vmem:[#allocation5 + $0x410] sm:$0xff]  ;;  %v515_v49 = vld [vmem:[#allocation5 + $0xed8] sm:$0xff] }
  0xbd   :  { %1534 = vmatpush1.bf16.xpose.msra.mxu1 %v1533_v55  ;;  %v1555_v55 = vpack.c.bf16 %v435_v51, %v427_v50  ;;  %v1573_v51 = vpack.c.bf16 %v498_v46, %v490_v45  ;;  %v68_v45 = vld [vmem:[#allocation5 + $0xe0] sm:$0xff] }
  0xbe   :  { %1536 = vmatprep.subr.bf16.mxu1 %v1535_v57  ;;  %v178_v57 = vld [vmem:[#allocation5 + $0x450] sm:$0xff]  ;;  %v316_v46 = vld [vmem:[#allocation5 + $0x8a0] sm:$0xff] }
  0xbf   :  { %v1301_v0 = vpack.c.bf16 %v178_v57, %v170_v56  ;;  %v506_v56 = vld [vmem:[#allocation5 + $0xe90] sm:$0xff] }
  0xc0   :  { %v514_v57 = vld [vmem:[#allocation5 + $0xed0] sm:$0xff] }
  0xc3   :  { %1282 = vmatpush1.bf16.xpose.msra.mxu0 %v1281_v2  ;;  %v1303_v2 = vpack.c.bf16 %v195_v61, %v187_v60  ;;  %v523_v60 = vld [vmem:[#allocation5 + $0xf18] sm:$0xff] }
  0xc4   :  { %1284 = vmatprep.subr.bf16.mxu0 %v1283_v4  ;;  %v186_v4 = vld [vmem:[#allocation5 + $0x490] sm:$0xff]  ;;  %v531_v61 = vld [vmem:[#allocation5 + $0xf58] sm:$0xff] }
  0xc5   :  { %1538 = vmatpush1.bf16.xpose.msra.mxu1 %v1537_v3  ;;  %v1559_v3 = vpack.c.bf16 %v451_v63, %v443_v62  ;;  %v1577_v63 = vpack.c.bf16 %v514_v57, %v506_v56  ;;  %v332_v56 = vld [vmem:[#allocation5 + $0x920] sm:$0xff] }
  0xc6   :  { %1540 = vmatprep.subr.bf16.mxu1 %v1539_v5  ;;  %v194_v5 = vld [vmem:[#allocation5 + $0x4d0] sm:$0xff]  ;;  %v340_v57 = vld [vmem:[#allocation5 + $0x960] sm:$0xff] }
  0xc7   :  { %v1305_v12 = vpack.c.bf16 %v194_v5, %v186_v4  ;;  %v522_v4 = vld [vmem:[#allocation5 + $0xf10] sm:$0xff] }
  0xc8   :  { %v530_v5 = vld [vmem:[#allocation5 + $0xf50] sm:$0xff] }
  0xcb   :  { %1286 = vmatpush1.bf16.xpose.msra.mxu0 %v1285_v14  ;;  %v1307_v14 = vpack.c.bf16 %v211_v9, %v203_v8  ;;  %v539_v8 = vld [vmem:[#allocation5 + $0xf98] sm:$0xff] }
  0xcc   :  { %1288 = vmatprep.subr.bf16.mxu0 %v1287_v17  ;;  %v202_v17 = vld [vmem:[#allocation5 + $0x510] sm:$0xff]  ;;  %v547_v9 = vld [vmem:[#allocation5 + $0xfd8] sm:$0xff] }
  0xcd   :  { %1542 = vmatpush1.bf16.xpose.msra.mxu1 %v1541_v16  ;;  %v1563_v16 = vpack.c.bf16 %v467_v11, %v459_v10  ;;  %v1581_v11 = vpack.c.bf16 %v530_v5, %v522_v4  ;;  %v348_v4 = vld [vmem:[#allocation5 + $0x9a0] sm:$0xff] }
  0xce   :  { %1544 = vmatprep.subr.bf16.mxu1 %v1543_v18  ;;  %v210_v18 = vld [vmem:[#allocation5 + $0x550] sm:$0xff]  ;;  %v356_v5 = vld [vmem:[#allocation5 + $0x9e0] sm:$0xff] }
  0xcf   :  { %v1309_v27 = vpack.c.bf16 %v210_v18, %v202_v17  ;;  %v538_v17 = vld [vmem:[#allocation5 + $0xf90] sm:$0xff] }
  0xd0   :  { %v546_v18 = vld [vmem:[#allocation5 + $0xfd0] sm:$0xff] }
  0xd3   :  { %1290 = vmatpush1.bf16.xpose.msra.mxu0 %v1289_v30  ;;  %v1311_v30 = vpack.c.bf16 %v227_v24, %v219_v23  ;;  %v301_v23 = vld [vmem:[#allocation5 + $0x828] sm:$0xff] }
  0xd4   :  { %1292 = vmatprep.subr.bf16.mxu0 %v1291_v32  ;;  %v218_v32 = vld [vmem:[#allocation5 + $0x590] sm:$0xff]  ;;  %v309_v24 = vld [vmem:[#allocation5 + $0x868] sm:$0xff] }
  0xd5   :  { %1546 = vmatpush1.bf16.xpose.msra.mxu1 %v1545_v31  ;;  %v1567_v31 = vpack.c.bf16 %v483_v26, %v475_v25  ;;  %v1585_v26 = vpack.c.bf16 %v546_v18, %v538_v17  ;;  %v364_v17 = vld [vmem:[#allocation5 + $0xa20] sm:$0xff] }
  0xd6   :  { %1548 = vmatprep.subr.bf16.mxu1 %v1547_v33  ;;  %v226_v33 = vld [vmem:[#allocation5 + $0x5d0] sm:$0xff]  ;;  %v372_v18 = vld [vmem:[#allocation5 + $0xa60] sm:$0xff] }
  0xd7   :  { %v1313_v39 = vpack.c.bf16 %v226_v33, %v218_v32  ;;  %v300_v32 = vld [vmem:[#allocation5 + $0x820] sm:$0xff]  ;;  %v1878_v33 = vld [vmem:[#allocation2 + $0x8] sm:$0xff] }
  0xdb   :  { %1294 = vmatpush1.bf16.xpose.msra.mxu0 %v1293_v41  ;;  %v1315_v41 = vpack.c.bf16 %v243_v36, %v235_v35  ;;  %v69_v35 = vld [vmem:[#allocation5 + $0xe8] sm:$0xff]  ;;  %v1882_v36 = vrot.slane %v1878_v33, %v1859_v15 }
  0xdc   :  { %1296 = vmatprep.subr.bf16.mxu0 %v1295_v43  ;;  %v234_v43 = vld [vmem:[#allocation5 + $0x610] sm:$0xff] }
  0xdd   :  { %1550 = vmatpush1.bf16.xpose.msra.mxu1 %v1549_v42  ;;  %v1571_v42 = vpack.c.bf16 %v499_v38, %v491_v37  ;;  %v317_v37 = vld [vmem:[#allocation5 + $0x8a8] sm:$0xff] }
  0xde   :  { %1552 = vmatprep.subr.bf16.mxu1 %v1551_v44  ;;  %v242_v44 = vld [vmem:[#allocation5 + $0x650] sm:$0xff]  ;;  %v325_v38 = vld [vmem:[#allocation5 + $0x8e8] sm:$0xff] }
  0xdf   :  { %v1317_v50 = vpack.c.bf16 %v242_v44, %v234_v43  ;;  %v586_v43 = vcombine.high %v1882_v36, %v1882_v36  ;;  %v60_v44 = vld [vmem:[#allocation5 + $0xa0] sm:$0xff] }
  0xe3   :  { %1298 = vmatpush1.bf16.xpose.msra.mxu0 %v1297_v52  ;;  %v1319_v52 = vpack.c.bf16 %v259_v47, %v251_v21  ;;  %v324_v21 = vld [vmem:[#allocation5 + $0x8e0] sm:$0xff]  ;;  %v77_v47 = vld [vmem:[#allocation5 + $0x128] sm:$0xff] }
  0xe4   :  { %1300 = vmatprep.subr.bf16.mxu0 %v1299_v54  ;;  %v250_v54 = vld [vmem:[#allocation5 + $0x690] sm:$0xff] }
  0xe5   :  { %1554 = vmatpush1.bf16.xpose.msra.mxu1 %v1553_v53  ;;  %v1575_v53 = vpack.c.bf16 %v515_v49, %v507_v48  ;;  %v85_v48 = vld [vmem:[#allocation5 + $0x168] sm:$0xff] }
  0xe6   :  { %1556 = vmatprep.subr.bf16.mxu1 %v1555_v55  ;;  %v258_v55 = vld [vmem:[#allocation5 + $0x6d0] sm:$0xff]  ;;  %v333_v49 = vld [vmem:[#allocation5 + $0x928] sm:$0xff] }
  0xe7   :  { %v1321_v62 = vpack.c.bf16 %v258_v55, %v250_v54  ;;  %v84_v55 = vld [vmem:[#allocation5 + $0x160] sm:$0xff] }
  0xeb   :  { %1302 = vmatpush1.bf16.xpose.msra.mxu0 %v1301_v0  ;;  %v1323_v0 = vpack.c.bf16 %v275_v59, %v267_v58  ;;  %v93_v58 = vld [vmem:[#allocation5 + $0x1a8] sm:$0xff] }
  0xec   :  { %1304 = vmatprep.subr.bf16.mxu0 %v1303_v2  ;;  %v266_v2 = vld [vmem:[#allocation5 + $0x710] sm:$0xff]  ;;  %v101_v59 = vld [vmem:[#allocation5 + $0x1e8] sm:$0xff] }
  0xed   :  { %1558 = vmatpush1.bf16.xpose.msra.mxu1 %v1557_v1  ;;  %v1579_v1 = vpack.c.bf16 %v531_v61, %v523_v60  ;;  %v349_v60 = vld [vmem:[#allocation5 + $0x9a8] sm:$0xff] }
  0xee   :  { %1560 = vmatprep.subr.bf16.mxu1 %v1559_v3  ;;  %v274_v3 = vld [vmem:[#allocation5 + $0x750] sm:$0xff]  ;;  %v357_v61 = vld [vmem:[#allocation5 + $0x9e8] sm:$0xff] }
  0xef   :  { %v1325_v10 = vpack.c.bf16 %v274_v3, %v266_v2  ;;  %v92_v2 = vld [vmem:[#allocation5 + $0x1a0] sm:$0xff] }
  0xf0   :  { %v100_v3 = vld [vmem:[#allocation5 + $0x1e0] sm:$0xff] }
  0xf3   :  { %1306 = vmatpush1.bf16.xpose.msra.mxu0 %v1305_v12  ;;  %v1327_v12 = vpack.c.bf16 %v291_v7, %v283_v6  ;;  %v109_v6 = vld [vmem:[#allocation5 + $0x228] sm:$0xff] }
  0xf4   :  { %1308 = vmatprep.subr.bf16.mxu0 %v1307_v14  ;;  %v282_v14 = vld [vmem:[#allocation5 + $0x790] sm:$0xff]  ;;  %v117_v7 = vld [vmem:[#allocation5 + $0x268] sm:$0xff] }
  0xf5   :  { %1562 = vmatpush1.bf16.xpose.msra.mxu1 %v1561_v13  ;;  %v1583_v13 = vpack.c.bf16 %v547_v9, %v539_v8  ;;  %v365_v8 = vld [vmem:[#allocation5 + $0xa28] sm:$0xff] }
  0xf6   :  { %1564 = vmatprep.subr.bf16.mxu1 %v1563_v16  ;;  %v290_v16 = vld [vmem:[#allocation5 + $0x7d0] sm:$0xff]  ;;  %v373_v9 = vld [vmem:[#allocation5 + $0xa68] sm:$0xff] }
  0xf7   :  { %v1329_v25 = vpack.c.bf16 %v290_v16, %v282_v14  ;;  %v108_v14 = vld [vmem:[#allocation5 + $0x220] sm:$0xff] }
  0xf8   :  { %v116_v16 = vld [vmem:[#allocation5 + $0x260] sm:$0xff] }
  0xfb   :  { %1310 = vmatpush1.bf16.xpose.msra.mxu0 %v1309_v27  ;;  %v1331_v27 = vpack.c.bf16 %v53_v22, %v45_v19  ;;  %v125_v19 = vld [vmem:[#allocation5 + $0x2a8] sm:$0xff] }
  0xfc   :  { %1312 = vmatprep.subr.bf16.mxu0 %v1311_v30  ;;  %v44_v30 = vld [vmem:[#allocation5 + $0x20] sm:$0xff]  ;;  %v133_v22 = vld [vmem:[#allocation5 + $0x2e8] sm:$0xff] }
  0xfd   :  { %1566 = vmatpush1.bf16.xpose.msra.mxu1 %v1565_v29  ;;  %v1587_v29 = vpack.c.bf16 %v309_v24, %v301_v23  ;;  %v381_v23 = vld [vmem:[#allocation5 + $0xaa8] sm:$0xff] }
  0xfe   :  { %1568 = vmatprep.subr.bf16.mxu1 %v1567_v31  ;;  %v52_v31 = vld [vmem:[#allocation5 + $0x60] sm:$0xff]  ;;  %v389_v24 = vld [vmem:[#allocation5 + $0xae8] sm:$0xff] }
 0x103   :  { %1314 = vmatpush1.bf16.xpose.msra.mxu0 %v1313_v39  ;;  %v1333_v39 = vpack.c.bf16 %v52_v31, %v44_v30  ;;  %v124_v30 = vld [vmem:[#allocation5 + $0x2a0] sm:$0xff] }
 0x104   :  { %1316 = vmatprep.subr.bf16.mxu0 %v1315_v41  ;;  %v1335_v41 = vpack.c.bf16 %v69_v35, %v61_v34  ;;  %v132_v31 = vld [vmem:[#allocation5 + $0x2e0] sm:$0xff]  ;;  %v141_v34 = vld [vmem:[#allocation5 + $0x328] sm:$0xff] }
 0x105   :  { %1570 = vmatpush1.bf16.xpose.msra.mxu1 %v1569_v40  ;;  %v1589_v40 = vpack.c.bf16 %v308_v20, %v300_v32  ;;  %v380_v32 = vld [vmem:[#allocation5 + $0xaa0] sm:$0xff]  ;;  %v149_v35 = vld [vmem:[#allocation5 + $0x368] sm:$0xff] }
 0x106   :  { %1572 = vmatprep.subr.bf16.mxu1 %v1571_v42  ;;  %v1591_v42 = vpack.c.bf16 %v325_v38, %v317_v37  ;;  %v388_v20 = vld [vmem:[#allocation5 + $0xae0] sm:$0xff]  ;;  %v397_v37 = vld [vmem:[#allocation5 + $0xb28] sm:$0xff] }
 0x107   :  { %v405_v38 = vld [vmem:[#allocation5 + $0xb68] sm:$0xff] }
 0x10b   :  { %1318 = vmatpush1.bf16.xpose.msra.mxu0 %v1317_v50  ;;  %v341_v50 = vld [vmem:[#allocation5 + $0x968] sm:$0xff] }
 0x10c   :  { %1320 = vmatprep.subr.bf16.mxu0 %v1319_v52  ;;  %v1593_v52 = vpack.c.bf16 %v324_v21, %v316_v46  ;;  %v1595_v54 = vpack.c.bf16 %v341_v50, %v333_v49  ;;  %v404_v46 = vld [vmem:[#allocation5 + $0xb60] sm:$0xff]  ;;  %v157_v21 = vld [vmem:[#allocation5 + $0x3a8] sm:$0xff] }
 0x10d   :  { %1574 = vmatpush1.bf16.xpose.msra.mxu1 %v1573_v51  ;;  %v1337_v51 = vpack.c.bf16 %v68_v45, %v60_v44  ;;  %v148_v44 = vld [vmem:[#allocation5 + $0x360] sm:$0xff]  ;;  %v421_v49 = vld [vmem:[#allocation5 + $0xbe8] sm:$0xff] }
 0x10e   :  { %1576 = vmatprep.subr.bf16.mxu1 %v1575_v53  ;;  %v1339_v53 = vpack.c.bf16 %v85_v48, %v77_v47  ;;  %v396_v45 = vld [vmem:[#allocation5 + $0xb20] sm:$0xff]  ;;  %v165_v47 = vld [vmem:[#allocation5 + $0x3e8] sm:$0xff] }
 0x10f   :  { %v413_v48 = vld [vmem:[#allocation5 + $0xba8] sm:$0xff] }
 0x113   :  { %1322 = vmatpush1.bf16.xpose.msra.mxu0 %v1321_v62 }
 0x114   :  { %1324 = vmatprep.subr.bf16.mxu0 %v1323_v0  ;;  %v1343_v0 = vpack.c.bf16 %v101_v59, %v93_v58  ;;  %v181_v58 = vld [vmem:[#allocation5 + $0x468] sm:$0xff] }
 0x115   :  { %1578 = vmatpush1.bf16.xpose.msra.mxu1 %v1577_v63  ;;  %v1597_v63 = vpack.c.bf16 %v340_v57, %v332_v56  ;;  %v420_v56 = vld [vmem:[#allocation5 + $0xbe0] sm:$0xff]  ;;  %v173_v57 = vld [vmem:[#allocation5 + $0x428] sm:$0xff] }
 0x116   :  { %1580 = vmatprep.subr.bf16.mxu1 %v1579_v1  ;;  %v1599_v1 = vpack.c.bf16 %v357_v61, %v349_v60  ;;  %v429_v59 = vld [vmem:[#allocation5 + $0xc28] sm:$0xff] }
 0x117   :  { %v437_v60 = vld [vmem:[#allocation5 + $0xc68] sm:$0xff] }
 0x11b   :  { %1326 = vmatpush1.bf16.xpose.msra.mxu0 %v1325_v10  ;;  %v1345_v10 = vpack.c.bf16 %v100_v3, %v92_v2  ;;  %v180_v2 = vld [vmem:[#allocation5 + $0x460] sm:$0xff] }
 0x11c   :  { %1328 = vmatprep.subr.bf16.mxu0 %v1327_v12  ;;  %v1347_v12 = vpack.c.bf16 %v117_v7, %v109_v6  ;;  %v428_v3 = vld [vmem:[#allocation5 + $0xc20] sm:$0xff]  ;;  %v197_v6 = vld [vmem:[#allocation5 + $0x4e8] sm:$0xff] }
 0x11d   :  { %1582 = vmatpush1.bf16.xpose.msra.mxu1 %v1581_v11  ;;  %v1601_v11 = vpack.c.bf16 %v356_v5, %v348_v4  ;;  %v436_v4 = vld [vmem:[#allocation5 + $0xc60] sm:$0xff]  ;;  %v189_v5 = vld [vmem:[#allocation5 + $0x4a8] sm:$0xff] }
 0x11e   :  { %1584 = vmatprep.subr.bf16.mxu1 %v1583_v13  ;;  %v1603_v13 = vpack.c.bf16 %v373_v9, %v365_v8  ;;  %v445_v7 = vld [vmem:[#allocation5 + $0xca8] sm:$0xff] }
 0x11f   :  { %v453_v8 = vld [vmem:[#allocation5 + $0xce8] sm:$0xff] }
 0x123   :  { %1330 = vmatpush1.bf16.xpose.msra.mxu0 %v1329_v25  ;;  %v1349_v25 = vpack.c.bf16 %v116_v16, %v108_v14  ;;  %v196_v14 = vld [vmem:[#allocation5 + $0x4e0] sm:$0xff] }
 0x124   :  { %1332 = vmatprep.subr.bf16.mxu0 %v1331_v27  ;;  %v1351_v27 = vpack.c.bf16 %v133_v22, %v125_v19  ;;  %v444_v16 = vld [vmem:[#allocation5 + $0xca0] sm:$0xff]  ;;  %v213_v19 = vld [vmem:[#allocation5 + $0x568] sm:$0xff] }
 0x125   :  { %1586 = vmatpush1.bf16.xpose.msra.mxu1 %v1585_v26  ;;  %v1605_v26 = vpack.c.bf16 %v372_v18, %v364_v17  ;;  %v452_v17 = vld [vmem:[#allocation5 + $0xce0] sm:$0xff]  ;;  %v205_v18 = vld [vmem:[#allocation5 + $0x528] sm:$0xff] }
 0x126   :  { %1588 = vmatprep.subr.bf16.mxu1 %v1587_v29  ;;  %v1607_v29 = vpack.c.bf16 %v389_v24, %v381_v23  ;;  %v461_v22 = vld [vmem:[#allocation5 + $0xd28] sm:$0xff] }
 0x127   :  { %v469_v23 = vld [vmem:[#allocation5 + $0xd68] sm:$0xff] }
 0x12a   :  { %732 = vmatmul.mubr.f32.vlgmr.msra.gmra.mrb[0].mxu0 %v1872_v28 }
 0x12b   :  { %1334 = vmatpush1.bf16.xpose.msra.mxu0 %v1333_v39  ;;  %802 = vmatprep.mubr.f32.mxu0 %v586_v43  ;;  %v1353_v39 = vpack.c.bf16 %v132_v31, %v124_v30  ;;  %v212_v30 = vld [vmem:[#allocation5 + $0x560] sm:$0xff] }
 0x12c   :  { %1016 = vmatmul.mubr.f32.vlgmr.msra.gmra.mrb[0].mxu1 %v1872_v28  ;;  %1336 = vmatprep.subr.bf16.mxu0 %v1335_v41  ;;  %v76_v28 = vld [vmem:[#allocation5 + $0x120] sm:$0xff]  ;;  %v1355_v41 = vpack.c.bf16 %v149_v35, %v141_v34  ;;  %v229_v34 = vld [vmem:[#allocation5 + $0x5e8] sm:$0xff] }
 0x12d   :  { %1590 = vmatpush1.bf16.xpose.msra.mxu1 %v1589_v40  ;;  %1086 = vmatprep.mubr.f32.mxu1 %v586_v43  ;;  %v1341_v62 = vpack.c.bf16 %v84_v55, %v76_v28  ;;  %v1609_v40 = vpack.c.bf16 %v388_v20, %v380_v32  ;;  %v140_v43 = vld [vmem:[#allocation5 + $0x320] sm:$0xff]  ;;  %v221_v20 = vld [vmem:[#allocation5 + $0x5a8] sm:$0xff] }
 0x12e   :  { %1592 = vmatprep.subr.bf16.mxu1 %v1591_v42  ;;  %v1611_v42 = vpack.c.bf16 %v405_v38, %v397_v37  ;;  %v1357_v50 = vpack.c.bf16 %v148_v44, %v140_v43  ;;  %v164_v28 = vld [vmem:[#allocation5 + $0x3e0] sm:$0xff]  ;;  %v477_v35 = vld [vmem:[#allocation5 + $0xda8] sm:$0xff] }
 0x12f   :  { %v412_v55 = vld [vmem:[#allocation5 + $0xba0] sm:$0xff]  ;;  %v485_v37 = vld [vmem:[#allocation5 + $0xde8] sm:$0xff] }
 0x130   :  { %v460_v31 = vld [vmem:[#allocation5 + $0xd20] sm:$0xff] }
 0x131   :  { %v468_v32 = vld [vmem:[#allocation5 + $0xd60] sm:$0xff] }
 0x132   :  { %v228_v43 = vld [vmem:[#allocation5 + $0x5e0] sm:$0xff] }
 0x133   :  { %1338 = vmatpush1.bf16.xpose.msra.mxu0 %v1337_v51  ;;  %v1613_v51 = vpack.c.bf16 %v404_v46, %v396_v45  ;;  %v476_v44 = vld [vmem:[#allocation5 + $0xda0] sm:$0xff]  ;;  %v237_v46 = vld [vmem:[#allocation5 + $0x628] sm:$0xff] }
 0x134   :  { %1340 = vmatprep.subr.bf16.mxu0 %v1339_v53  ;;  %v1615_v53 = vpack.c.bf16 %v421_v49, %v413_v48  ;;  %v484_v45 = vld [vmem:[#allocation5 + $0xde0] sm:$0xff]  ;;  %v501_v48 = vld [vmem:[#allocation5 + $0xe68] sm:$0xff] }
 0x135   :  { %1594 = vmatpush1.bf16.xpose.msra.mxu1 %v1593_v52  ;;  %v1359_v52 = vpack.c.bf16 %v165_v47, %v157_v21  ;;  %v245_v21 = vld [vmem:[#allocation5 + $0x668] sm:$0xff] }
 0x136   :  { %1596 = vmatprep.subr.bf16.mxu1 %v1595_v54  ;;  %v156_v54 = vld [vmem:[#allocation5 + $0x3a0] sm:$0xff]  ;;  %v493_v47 = vld [vmem:[#allocation5 + $0xe28] sm:$0xff] }
 0x137   :  { %v1361_v61 = vpack.c.bf16 %v164_v28, %v156_v54  ;;  %v244_v54 = vld [vmem:[#allocation5 + $0x660] sm:$0xff] }
 0x138   :  { %v492_v28 = vld [vmem:[#allocation5 + $0xe20] sm:$0xff] }
 0x13b   :  { %1342 = vmatpush1.bf16.xpose.msra.mxu0 %v1341_v62  ;;  %v1617_v62 = vpack.c.bf16 %v420_v56, %v412_v55  ;;  %v500_v55 = vld [vmem:[#allocation5 + $0xe60] sm:$0xff]  ;;  %v253_v56 = vld [vmem:[#allocation5 + $0x6a8] sm:$0xff] }
 0x13c   :  { %1344 = vmatprep.subr.bf16.mxu0 %v1343_v0  ;;  %v1619_v0 = vpack.c.bf16 %v437_v60, %v429_v59  ;;  %v517_v59 = vld [vmem:[#allocation5 + $0xee8] sm:$0xff] }
 0x13d   :  { %1598 = vmatpush1.bf16.xpose.msra.mxu1 %v1597_v63  ;;  %v1363_v63 = vpack.c.bf16 %v181_v58, %v173_v57  ;;  %v261_v57 = vld [vmem:[#allocation5 + $0x6e8] sm:$0xff] }
 0x13e   :  { %1600 = vmatprep.subr.bf16.mxu1 %v1599_v1  ;;  %v172_v1 = vld [vmem:[#allocation5 + $0x420] sm:$0xff]  ;;  %v509_v58 = vld [vmem:[#allocation5 + $0xea8] sm:$0xff] }
 0x13f   :  { %v1365_v9 = vpack.c.bf16 %v180_v2, %v172_v1  ;;  %v260_v1 = vld [vmem:[#allocation5 + $0x6e0] sm:$0xff] }
 0x140   :  { %v508_v2 = vld [vmem:[#allocation5 + $0xea0] sm:$0xff] }
 0x143   :  { %1346 = vmatpush1.bf16.xpose.msra.mxu0 %v1345_v10  ;;  %v1621_v10 = vpack.c.bf16 %v436_v4, %v428_v3  ;;  %v516_v3 = vld [vmem:[#allocation5 + $0xee0] sm:$0xff]  ;;  %v269_v4 = vld [vmem:[#allocation5 + $0x728] sm:$0xff] }
 0x144   :  { %1348 = vmatprep.subr.bf16.mxu0 %v1347_v12  ;;  %v1623_v12 = vpack.c.bf16 %v453_v8, %v445_v7  ;;  %v533_v7 = vld [vmem:[#allocation5 + $0xf68] sm:$0xff] }
 0x145   :  { %1602 = vmatpush1.bf16.xpose.msra.mxu1 %v1601_v11  ;;  %v1367_v11 = vpack.c.bf16 %v197_v6, %v189_v5  ;;  %v277_v5 = vld [vmem:[#allocation5 + $0x768] sm:$0xff] }
 0x146   :  { %1604 = vmatprep.subr.bf16.mxu1 %v1603_v13  ;;  %v188_v13 = vld [vmem:[#allocation5 + $0x4a0] sm:$0xff]  ;;  %v525_v6 = vld [vmem:[#allocation5 + $0xf28] sm:$0xff] }
 0x147   :  { %v1369_v24 = vpack.c.bf16 %v196_v14, %v188_v13  ;;  %v276_v13 = vld [vmem:[#allocation5 + $0x760] sm:$0xff] }
 0x148   :  { %v524_v14 = vld [vmem:[#allocation5 + $0xf20] sm:$0xff] }
 0x14b   :  { %1350 = vmatpush1.bf16.xpose.msra.mxu0 %v1349_v25  ;;  %v1625_v25 = vpack.c.bf16 %v452_v17, %v444_v16  ;;  %v532_v16 = vld [vmem:[#allocation5 + $0xf60] sm:$0xff]  ;;  %v285_v17 = vld [vmem:[#allocation5 + $0x7a8] sm:$0xff] }
 0x14c   :  { %1352 = vmatprep.subr.bf16.mxu0 %v1351_v27  ;;  %v1627_v27 = vpack.c.bf16 %v469_v23, %v461_v22  ;;  %v549_v22 = vld [vmem:[#allocation5 + $0xfe8] sm:$0xff] }
 0x14d   :  { %1606 = vmatpush1.bf16.xpose.msra.mxu1 %v1605_v26  ;;  %v1371_v26 = vpack.c.bf16 %v213_v19, %v205_v18  ;;  %v293_v18 = vld [vmem:[#allocation5 + $0x7e8] sm:$0xff] }
 0x14e   :  { %1608 = vmatprep.subr.bf16.mxu1 %v1607_v29  ;;  %v204_v29 = vld [vmem:[#allocation5 + $0x520] sm:$0xff]  ;;  %v541_v19 = vld [vmem:[#allocation5 + $0xfa8] sm:$0xff] }
 0x14f   :  { %v1373_v38 = vpack.c.bf16 %v212_v30, %v204_v29  ;;  %v292_v29 = vld [vmem:[#allocation5 + $0x7e0] sm:$0xff] }
 0x150   :  { %v540_v30 = vld [vmem:[#allocation5 + $0xfa0] sm:$0xff] }
 0x153   :  { %1354 = vmatpush1.bf16.xpose.msra.mxu0 %v1353_v39  ;;  %v1629_v39 = vpack.c.bf16 %v468_v32, %v460_v31  ;;  %v548_v31 = vld [vmem:[#allocation5 + $0xfe0] sm:$0xff]  ;;  %v47_v32 = vld [vmem:[#allocation5 + $0x38] sm:$0xff] }
 0x154   :  { %1356 = vmatprep.subr.bf16.mxu0 %v1355_v41  ;;  %v1631_v41 = vpack.c.bf16 %v485_v37, %v477_v35  ;;  %v311_v35 = vld [vmem:[#allocation5 + $0x878] sm:$0xff] }
 0x155   :  { %1610 = vmatpush1.bf16.xpose.msra.mxu1 %v1609_v40  ;;  %v1375_v40 = vpack.c.bf16 %v229_v34, %v221_v20  ;;  %v55_v20 = vld [vmem:[#allocation5 + $0x78] sm:$0xff] }
 0x156   :  { %1612 = vmatprep.subr.bf16.mxu1 %v1611_v42  ;;  %v220_v42 = vld [vmem:[#allocation5 + $0x5a0] sm:$0xff]  ;;  %v303_v34 = vld [vmem:[#allocation5 + $0x838] sm:$0xff] }
 0x157   :  { %v1377_v49 = vpack.c.bf16 %v228_v43, %v220_v42  ;;  %v54_v42 = vld [vmem:[#allocation5 + $0x70] sm:$0xff] }
 0x158   :  { %v302_v43 = vld [vmem:[#allocation5 + $0x830] sm:$0xff] }
 0x15b   :  { %1358 = vmatpush1.bf16.xpose.msra.mxu0 %v1357_v50  ;;  %v1633_v50 = vpack.c.bf16 %v484_v45, %v476_v44  ;;  %v571_v44 = vcombine.high %v1878_v33, %v1878_v33  ;;  %v310_v45 = vld [vmem:[#allocation5 + $0x870] sm:$0xff] }
 0x15c   :  { %1360 = vmatprep.subr.bf16.mxu0 %v1359_v52  ;;  %v1635_v52 = vpack.c.bf16 %v501_v48, %v493_v47  ;;  %v319_v47 = vld [vmem:[#allocation5 + $0x8b8] sm:$0xff]  ;;  %v62_v33 = vld [vmem:[#allocation5 + $0xb0] sm:$0xff] }
 0x15d   :  { %1614 = vmatpush1.bf16.xpose.msra.mxu1 %v1613_v51  ;;  %v1379_v51 = vpack.c.bf16 %v245_v21, %v237_v46  ;;  %v63_v46 = vld [vmem:[#allocation5 + $0xb8] sm:$0xff] }
 0x15e   :  { %1616 = vmatprep.subr.bf16.mxu1 %v1615_v53  ;;  %v236_v53 = vld [vmem:[#allocation5 + $0x620] sm:$0xff]  ;;  %v71_v21 = vld [vmem:[#allocation5 + $0xf8] sm:$0xff] }
 0x15f   :  { %v1381_v60 = vpack.c.bf16 %v244_v54, %v236_v53  ;;  %v327_v48 = vld [vmem:[#allocation5 + $0x8f8] sm:$0xff] }
 0x160   :  { %v1655_v53 = vpack.c.bf16 %v327_v48, %v319_v47  ;;  %v407_v47 = vld [vmem:[#allocation5 + $0xb78] sm:$0xff] }
 0x163   :  { %1362 = vmatpush1.bf16.xpose.msra.mxu0 %v1361_v61  ;;  %v1637_v61 = vpack.c.bf16 %v500_v55, %v492_v28  ;;  %v70_v28 = vld [vmem:[#allocation5 + $0xf0] sm:$0xff] }
 0x164   :  { %1364 = vmatprep.subr.bf16.mxu0 %v1363_v63  ;;  %v1639_v63 = vpack.c.bf16 %v517_v59, %v509_v58  ;;  %v318_v55 = vld [vmem:[#allocation5 + $0x8b0] sm:$0xff]  ;;  %v87_v58 = vld [vmem:[#allocation5 + $0x178] sm:$0xff] }
 0x165   :  { %1618 = vmatpush1.bf16.xpose.msra.mxu1 %v1617_v62  ;;  %v1383_v62 = vpack.c.bf16 %v261_v57, %v253_v56  ;;  %v326_v56 = vld [vmem:[#allocation5 + $0x8f0] sm:$0xff]  ;;  %v79_v57 = vld [vmem:[#allocation5 + $0x138] sm:$0xff] }
 0x166   :  { %1620 = vmatprep.subr.bf16.mxu1 %v1619_v0  ;;  %v252_v0 = vld [vmem:[#allocation5 + $0x6a0] sm:$0xff]  ;;  %v335_v59 = vld [vmem:[#allocation5 + $0x938] sm:$0xff] }
 0x167   :  { %v1385_v8 = vpack.c.bf16 %v260_v1, %v252_v0  ;;  %v86_v1 = vld [vmem:[#allocation5 + $0x170] sm:$0xff] }
 0x16b   :  { %1366 = vmatpush1.bf16.xpose.msra.mxu0 %v1365_v9  ;;  %v1641_v9 = vpack.c.bf16 %v516_v3, %v508_v2  ;;  %v334_v2 = vld [vmem:[#allocation5 + $0x930] sm:$0xff] }
 0x16c   :  { %1368 = vmatprep.subr.bf16.mxu0 %v1367_v11  ;;  %v1643_v11 = vpack.c.bf16 %v533_v7, %v525_v6  ;;  %v342_v3 = vld [vmem:[#allocation5 + $0x970] sm:$0xff]  ;;  %v351_v6 = vld [vmem:[#allocation5 + $0x9b8] sm:$0xff] }
 0x16d   :  { %1622 = vmatpush1.bf16.xpose.msra.mxu1 %v1621_v10  ;;  %v1387_v10 = vpack.c.bf16 %v277_v5, %v269_v4  ;;  %v95_v4 = vld [vmem:[#allocation5 + $0x1b8] sm:$0xff] }
 0x16e   :  { %1624 = vmatprep.subr.bf16.mxu1 %v1623_v12  ;;  %v268_v12 = vld [vmem:[#allocation5 + $0x720] sm:$0xff]  ;;  %v103_v5 = vld [vmem:[#allocation5 + $0x1f8] sm:$0xff] }
 0x16f   :  { %v1389_v23 = vpack.c.bf16 %v276_v13, %v268_v12  ;;  %v359_v7 = vld [vmem:[#allocation5 + $0x9f8] sm:$0xff]  ;;  %v94_v12 = vld [vmem:[#allocation5 + $0x1b0] sm:$0xff] }
 0x170   :  { %v102_v13 = vld [vmem:[#allocation5 + $0x1f0] sm:$0xff] }
 0x173   :  { %1370 = vmatpush1.bf16.xpose.msra.mxu0 %v1369_v24  ;;  %v1645_v24 = vpack.c.bf16 %v532_v16, %v524_v14  ;;  %v350_v14 = vld [vmem:[#allocation5 + $0x9b0] sm:$0xff] }
 0x174   :  { %1372 = vmatprep.subr.bf16.mxu0 %v1371_v26  ;;  %v1647_v26 = vpack.c.bf16 %v549_v22, %v541_v19  ;;  %v358_v16 = vld [vmem:[#allocation5 + $0x9f0] sm:$0xff]  ;;  %v367_v19 = vld [vmem:[#allocation5 + $0xa38] sm:$0xff] }
 0x175   :  { %1626 = vmatpush1.bf16.xpose.msra.mxu1 %v1625_v25  ;;  %v1391_v25 = vpack.c.bf16 %v293_v18, %v285_v17  ;;  %v111_v17 = vld [vmem:[#allocation5 + $0x238] sm:$0xff] }
 0x176   :  { %1628 = vmatprep.subr.bf16.mxu1 %v1627_v27  ;;  %v284_v27 = vld [vmem:[#allocation5 + $0x7a0] sm:$0xff]  ;;  %v119_v18 = vld [vmem:[#allocation5 + $0x278] sm:$0xff] }
 0x177   :  { %v1393_v37 = vpack.c.bf16 %v292_v29, %v284_v27  ;;  %v375_v22 = vld [vmem:[#allocation5 + $0xa78] sm:$0xff]  ;;  %v110_v27 = vld [vmem:[#allocation5 + $0x230] sm:$0xff] }
 0x178   :  { %v118_v29 = vld [vmem:[#allocation5 + $0x270] sm:$0xff] }
 0x17b   :  { %1374 = vmatpush1.bf16.xpose.msra.mxu0 %v1373_v38  ;;  %v1649_v38 = vpack.c.bf16 %v548_v31, %v540_v30  ;;  %v366_v30 = vld [vmem:[#allocation5 + $0xa30] sm:$0xff] }
 0x17c   :  { %1376 = vmatprep.subr.bf16.mxu0 %v1375_v40  ;;  %v1651_v40 = vpack.c.bf16 %v311_v35, %v303_v34  ;;  %v374_v31 = vld [vmem:[#allocation5 + $0xa70] sm:$0xff]  ;;  %v383_v34 = vld [vmem:[#allocation5 + $0xab8] sm:$0xff] }
 0x17d   :  { %1630 = vmatpush1.bf16.xpose.msra.mxu1 %v1629_v39  ;;  %v1395_v39 = vpack.c.bf16 %v55_v20, %v47_v32  ;;  %v127_v32 = vld [vmem:[#allocation5 + $0x2b8] sm:$0xff] }
 0x17e   :  { %1632 = vmatprep.subr.bf16.mxu1 %v1631_v41  ;;  %v46_v41 = vld [vmem:[#allocation5 + $0x30] sm:$0xff]  ;;  %v135_v20 = vld [vmem:[#allocation5 + $0x2f8] sm:$0xff] }
 0x17f   :  { %v391_v35 = vld [vmem:[#allocation5 + $0xaf8] sm:$0xff] }
 0x183   :  { %1378 = vmatpush1.bf16.xpose.msra.mxu0 %v1377_v49  ;;  %v1891_v49 = vrot.slane %v571_v44, %v1859_v15  ;;  %v390_v44 = vld [vmem:[#allocation5 + $0xaf0] sm:$0xff] }
 0x184   :  { %1380 = vmatprep.subr.bf16.mxu0 %v1379_v51  ;;  %v1653_v51 = vpack.c.bf16 %v310_v45, %v302_v43  ;;  %v382_v43 = vld [vmem:[#allocation5 + $0xab0] sm:$0xff]  ;;  %v143_v45 = vld [vmem:[#allocation5 + $0x338] sm:$0xff] }
 0x185   :  { %1634 = vmatpush1.bf16.xpose.msra.mxu1 %v1633_v50  ;;  %v1397_v50 = vpack.c.bf16 %v54_v42, %v46_v41  ;;  %v587_v54 = vcombine.high %v1891_v49, %v1891_v49  ;;  %v126_v41 = vld [vmem:[#allocation5 + $0x2b0] sm:$0xff] }
 0x186   :  { %1636 = vmatprep.subr.bf16.mxu1 %v1635_v52  ;;  %v1399_v52 = vpack.c.bf16 %v71_v21, %v63_v46  ;;  %v134_v42 = vld [vmem:[#allocation5 + $0x2f0] sm:$0xff]  ;;  %v151_v46 = vld [vmem:[#allocation5 + $0x378] sm:$0xff] }
 0x187   :  { %v399_v21 = vld [vmem:[#allocation5 + $0xb38] sm:$0xff]  ;;  %v1417_v48 = vpack.c.bf16 %v134_v42, %v126_v41  ;;  %v462_v41 = vld [vmem:[#allocation5 + $0xd30] sm:$0xff] }
 0x188   :  { %v470_v42 = vld [vmem:[#allocation5 + $0xd70] sm:$0xff] }
 0x18b   :  { %1382 = vmatpush1.bf16.xpose.msra.mxu0 %v1381_v60  ;;  %v343_v60 = vld [vmem:[#allocation5 + $0x978] sm:$0xff] }
 0x18c   :  { %1384 = vmatprep.subr.bf16.mxu0 %v1383_v62  ;;  %v1657_v62 = vpack.c.bf16 %v326_v56, %v318_v55  ;;  %v1659_v0 = vpack.c.bf16 %v343_v60, %v335_v59  ;;  %v159_v55 = vld [vmem:[#allocation5 + $0x3b8] sm:$0xff] }
 0x18d   :  { %1638 = vmatpush1.bf16.xpose.msra.mxu1 %v1637_v61  ;;  %v1401_v61 = vpack.c.bf16 %v70_v28, %v62_v33  ;;  %v398_v33 = vld [vmem:[#allocation5 + $0xb30] sm:$0xff]  ;;  %v167_v56 = vld [vmem:[#allocation5 + $0x3f8] sm:$0xff] }
 0x18e   :  { %1640 = vmatprep.subr.bf16.mxu1 %v1639_v63  ;;  %v1403_v63 = vpack.c.bf16 %v87_v58, %v79_v57  ;;  %v406_v28 = vld [vmem:[#allocation5 + $0xb70] sm:$0xff]  ;;  %v415_v57 = vld [vmem:[#allocation5 + $0xbb8] sm:$0xff] }
 0x18f   :  { %v423_v58 = vld [vmem:[#allocation5 + $0xbf8] sm:$0xff]  ;;  %v1677_v60 = vpack.c.bf16 %v406_v28, %v398_v33 }
 0x190   :  { %v239_v33 = vld [vmem:[#allocation5 + $0x638] sm:$0xff] }
 0x191   :  { %v247_v28 = vld [vmem:[#allocation5 + $0x678] sm:$0xff] }
 0x193   :  { %1386 = vmatpush1.bf16.xpose.msra.mxu0 %v1385_v8 }
 0x194   :  { %1388 = vmatprep.subr.bf16.mxu0 %v1387_v10  ;;  %v1407_v10 = vpack.c.bf16 %v103_v5, %v95_v4  ;;  %v431_v4 = vld [vmem:[#allocation5 + $0xc38] sm:$0xff] }
 0x195   :  { %1642 = vmatpush1.bf16.xpose.msra.mxu1 %v1641_v9  ;;  %v1661_v9 = vpack.c.bf16 %v342_v3, %v334_v2  ;;  %v175_v2 = vld [vmem:[#allocation5 + $0x438] sm:$0xff] }
 0x196   :  { %1644 = vmatprep.subr.bf16.mxu1 %v1643_v11  ;;  %v1663_v11 = vpack.c.bf16 %v359_v7, %v351_v6  ;;  %v183_v3 = vld [vmem:[#allocation5 + $0x478] sm:$0xff] }
 0x197   :  { %v439_v5 = vld [vmem:[#allocation5 + $0xc78] sm:$0xff] }
 0x19b   :  { %1390 = vmatpush1.bf16.xpose.msra.mxu0 %v1389_v23  ;;  %v1409_v23 = vpack.c.bf16 %v102_v13, %v94_v12  ;;  %v430_v12 = vld [vmem:[#allocation5 + $0xc30] sm:$0xff] }
 0x19c   :  { %1392 = vmatprep.subr.bf16.mxu0 %v1391_v25  ;;  %v1411_v25 = vpack.c.bf16 %v119_v18, %v111_v17  ;;  %v438_v13 = vld [vmem:[#allocation5 + $0xc70] sm:$0xff]  ;;  %v447_v17 = vld [vmem:[#allocation5 + $0xcb8] sm:$0xff] }
 0x19d   :  { %1646 = vmatpush1.bf16.xpose.msra.mxu1 %v1645_v24  ;;  %v1665_v24 = vpack.c.bf16 %v358_v16, %v350_v14  ;;  %v191_v14 = vld [vmem:[#allocation5 + $0x4b8] sm:$0xff] }
 0x19e   :  { %1648 = vmatprep.subr.bf16.mxu1 %v1647_v26  ;;  %v1667_v26 = vpack.c.bf16 %v375_v22, %v367_v19  ;;  %v199_v16 = vld [vmem:[#allocation5 + $0x4f8] sm:$0xff]  ;;  %v1685_v22 = vpack.c.bf16 %v438_v13, %v430_v12 }
 0x19f   :  { %v455_v18 = vld [vmem:[#allocation5 + $0xcf8] sm:$0xff] }
 0x1a0   :  { %v271_v12 = vld [vmem:[#allocation5 + $0x738] sm:$0xff] }
 0x1a1   :  { %v279_v13 = vld [vmem:[#allocation5 + $0x778] sm:$0xff] }
 0x1a3   :  { %1394 = vmatpush1.bf16.xpose.msra.mxu0 %v1393_v37  ;;  %v1413_v37 = vpack.c.bf16 %v118_v29, %v110_v27  ;;  %v446_v27 = vld [vmem:[#allocation5 + $0xcb0] sm:$0xff] }
 0x1a4   :  { %1396 = vmatprep.subr.bf16.mxu0 %v1395_v39  ;;  %v1415_v39 = vpack.c.bf16 %v135_v20, %v127_v32  ;;  %v454_v29 = vld [vmem:[#allocation5 + $0xcf0] sm:$0xff]  ;;  %v463_v32 = vld [vmem:[#allocation5 + $0xd38] sm:$0xff] }
 0x1a5   :  { %1650 = vmatpush1.bf16.xpose.msra.mxu1 %v1649_v38  ;;  %v1669_v38 = vpack.c.bf16 %v374_v31, %v366_v30  ;;  %v207_v30 = vld [vmem:[#allocation5 + $0x538] sm:$0xff] }
 0x1a6   :  { %1652 = vmatprep.subr.bf16.mxu1 %v1651_v40  ;;  %v1671_v40 = vpack.c.bf16 %v391_v35, %v383_v34  ;;  %v215_v31 = vld [vmem:[#allocation5 + $0x578] sm:$0xff]  ;;  %v1689_v35 = vpack.c.bf16 %v454_v29, %v446_v27 }
 0x1a7   :  { %v471_v20 = vld [vmem:[#allocation5 + $0xd78] sm:$0xff] }
 0x1a8   :  { %v287_v27 = vld [vmem:[#allocation5 + $0x7b8] sm:$0xff] }
 0x1a9   :  { %v295_v29 = vld [vmem:[#allocation5 + $0x7f8] sm:$0xff] }
 0x1aa   :  { %803 = vmatmul.mubr.f32.vlgmr.msra.gmra.mrb[0].mxu0 %v1882_v36 }
 0x1ab   :  { %1398 = vmatpush1.bf16.xpose.msra.mxu0 %v1397_v50  ;;  %873 = vmatprep.mubr.f32.mxu0 %v587_v54  ;;  %v1673_v50 = vpack.c.bf16 %v390_v44, %v382_v43  ;;  %v223_v43 = vld [vmem:[#allocation5 + $0x5b8] sm:$0xff] }
 0x1ac   :  { %1087 = vmatmul.mubr.f32.vlgmr.msra.gmra.mrb[0].mxu1 %v1882_v36  ;;  %1400 = vmatprep.subr.bf16.mxu0 %v1399_v52  ;;  %v78_v36 = vld [vmem:[#allocation5 + $0x130] sm:$0xff]  ;;  %v1675_v52 = vpack.c.bf16 %v407_v47, %v399_v21  ;;  %v231_v44 = vld [vmem:[#allocation5 + $0x5f8] sm:$0xff]  ;;  %v1693_v47 = vpack.c.bf16 %v470_v42, %v462_v41 }
 0x1ad   :  { %1654 = vmatpush1.bf16.xpose.msra.mxu1 %v1653_v51  ;;  %1157 = vmatprep.mubr.f32.mxu1 %v587_v54  ;;  %v1405_v8 = vpack.c.bf16 %v86_v1, %v78_v36  ;;  %v1419_v51 = vpack.c.bf16 %v151_v46, %v143_v45  ;;  %v150_v54 = vld [vmem:[#allocation5 + $0x370] sm:$0xff]  ;;  %v479_v45 = vld [vmem:[#allocation5 + $0xdb8] sm:$0xff] }
 0x1ae   :  { %1656 = vmatprep.subr.bf16.mxu1 %v1655_v53  ;;  %v142_v53 = vld [vmem:[#allocation5 + $0x330] sm:$0xff]  ;;  %v487_v46 = vld [vmem:[#allocation5 + $0xdf8] sm:$0xff] }
 0x1af   :  { %v1421_v59 = vpack.c.bf16 %v150_v54, %v142_v53  ;;  %v414_v36 = vld [vmem:[#allocation5 + $0xbb0] sm:$0xff] }
 0x1b0   :  { %v422_v1 = vld [vmem:[#allocation5 + $0xbf0] sm:$0xff] }
 0x1b1   :  { %v1681_v7 = vpack.c.bf16 %v422_v1, %v414_v36  ;;  %v478_v53 = vld [vmem:[#allocation5 + $0xdb0] sm:$0xff]  ;;  %v255_v36 = vld [vmem:[#allocation5 + $0x6b8] sm:$0xff] }
 0x1b2   :  { %v486_v54 = vld [vmem:[#allocation5 + $0xdf0] sm:$0xff]  ;;  %v263_v1 = vld [vmem:[#allocation5 + $0x6f8] sm:$0xff] }
 0x1b3   :  { %1402 = vmatpush1.bf16.xpose.msra.mxu0 %v1401_v61  ;;  %v1423_v61 = vpack.c.bf16 %v167_v56, %v159_v55  ;;  %v495_v55 = vld [vmem:[#allocation5 + $0xe38] sm:$0xff] }
 0x1b4   :  { %1404 = vmatprep.subr.bf16.mxu0 %v1403_v63  ;;  %v158_v63 = vld [vmem:[#allocation5 + $0x3b0] sm:$0xff]  ;;  %v503_v56 = vld [vmem:[#allocation5 + $0xe78] sm:$0xff] }
 0x1b5   :  { %1658 = vmatpush1.bf16.xpose.msra.mxu1 %v1657_v62  ;;  %v1679_v62 = vpack.c.bf16 %v423_v58, %v415_v57  ;;  %v1697_v58 = vpack.c.bf16 %v486_v54, %v478_v53 }
 0x1b6   :  { %1660 = vmatprep.subr.bf16.mxu1 %v1659_v0  ;;  %v166_v0 = vld [vmem:[#allocation5 + $0x3f0] sm:$0xff] }
 0x1b7   :  { %v1425_v6 = vpack.c.bf16 %v166_v0, %v158_v63  ;;  %v494_v63 = vld [vmem:[#allocation5 + $0xe30] sm:$0xff] }
 0x1b8   :  { %v502_v0 = vld [vmem:[#allocation5 + $0xe70] sm:$0xff] }
 0x1bb   :  { %1406 = vmatpush1.bf16.xpose.msra.mxu0 %v1405_v8  ;;  %v1427_v8 = vpack.c.bf16 %v183_v3, %v175_v2  ;;  %v511_v2 = vld [vmem:[#allocation5 + $0xeb8] sm:$0xff] }
 0x1bc   :  { %1408 = vmatprep.subr.bf16.mxu0 %v1407_v10  ;;  %v174_v10 = vld [vmem:[#allocation5 + $0x430] sm:$0xff]  ;;  %v519_v3 = vld [vmem:[#allocation5 + $0xef8] sm:$0xff] }
 0x1bd   :  { %1662 = vmatpush1.bf16.xpose.msra.mxu1 %v1661_v9  ;;  %v1683_v9 = vpack.c.bf16 %v439_v5, %v431_v4  ;;  %v1701_v5 = vpack.c.bf16 %v502_v0, %v494_v63 }
 0x1be   :  { %1664 = vmatprep.subr.bf16.mxu1 %v1663_v11  ;;  %v182_v11 = vld [vmem:[#allocation5 + $0x470] sm:$0xff] }
 0x1bf   :  { %v1429_v19 = vpack.c.bf16 %v182_v11, %v174_v10  ;;  %v510_v10 = vld [vmem:[#allocation5 + $0xeb0] sm:$0xff] }
 0x1c0   :  { %v518_v11 = vld [vmem:[#allocation5 + $0xef0] sm:$0xff] }
 0x1c3   :  { %1410 = vmatpush1.bf16.xpose.msra.mxu0 %v1409_v23  ;;  %v1431_v23 = vpack.c.bf16 %v199_v16, %v191_v14  ;;  %v527_v14 = vld [vmem:[#allocation5 + $0xf38] sm:$0xff] }
 0x1c4   :  { %1412 = vmatprep.subr.bf16.mxu0 %v1411_v25  ;;  %v190_v25 = vld [vmem:[#allocation5 + $0x4b0] sm:$0xff]  ;;  %v535_v16 = vld [vmem:[#allocation5 + $0xf78] sm:$0xff] }
 0x1c5   :  { %1666 = vmatpush1.bf16.xpose.msra.mxu1 %v1665_v24  ;;  %v1687_v24 = vpack.c.bf16 %v455_v18, %v447_v17  ;;  %v1705_v18 = vpack.c.bf16 %v518_v11, %v510_v10 }
 0x1c6   :  { %1668 = vmatprep.subr.bf16.mxu1 %v1667_v26  ;;  %v198_v26 = vld [vmem:[#allocation5 + $0x4f0] sm:$0xff] }
 0x1c7   :  { %v1433_v34 = vpack.c.bf16 %v198_v26, %v190_v25  ;;  %v526_v25 = vld [vmem:[#allocation5 + $0xf30] sm:$0xff] }
 0x1c8   :  { %v534_v26 = vld [vmem:[#allocation5 + $0xf70] sm:$0xff] }
 0x1cb   :  { %1414 = vmatpush1.bf16.xpose.msra.mxu0 %v1413_v37  ;;  %v1435_v37 = vpack.c.bf16 %v215_v31, %v207_v30  ;;  %v543_v30 = vld [vmem:[#allocation5 + $0xfb8] sm:$0xff] }
 0x1cc   :  { %1416 = vmatprep.subr.bf16.mxu0 %v1415_v39  ;;  %v206_v39 = vld [vmem:[#allocation5 + $0x530] sm:$0xff]  ;;  %v551_v31 = vld [vmem:[#allocation5 + $0xff8] sm:$0xff] }
 0x1cd   :  { %1670 = vmatpush1.bf16.xpose.msra.mxu1 %v1669_v38  ;;  %v1691_v38 = vpack.c.bf16 %v471_v20, %v463_v32  ;;  %v1709_v20 = vpack.c.bf16 %v534_v26, %v526_v25 }
 0x1ce   :  { %1672 = vmatprep.subr.bf16.mxu1 %v1671_v40  ;;  %v214_v40 = vld [vmem:[#allocation5 + $0x570] sm:$0xff] }
 0x1cf   :  { %v1437_v21 = vpack.c.bf16 %v214_v40, %v206_v39  ;;  %v542_v39 = vld [vmem:[#allocation5 + $0xfb0] sm:$0xff] }
 0x1d0   :  { %v550_v40 = vld [vmem:[#allocation5 + $0xff0] sm:$0xff] }
 0x1d1   :  { %v1713_v42 = vpack.c.bf16 %v550_v40, %v542_v39 }
 0x1d3   :  { %1418 = vmatpush1.bf16.xpose.msra.mxu0 %v1417_v48  ;;  %v1439_v48 = vpack.c.bf16 %v231_v44, %v223_v43 }
 0x1d4   :  { %1420 = vmatprep.subr.bf16.mxu0 %v1419_v51  ;;  %v222_v51 = vld [vmem:[#allocation5 + $0x5b0] sm:$0xff] }
 0x1d5   :  { %1674 = vmatpush1.bf16.xpose.msra.mxu1 %v1673_v50  ;;  %v1695_v50 = vpack.c.bf16 %v487_v46, %v479_v45 }
 0x1d6   :  { %1676 = vmatprep.subr.bf16.mxu1 %v1675_v52  ;;  %v230_v52 = vld [vmem:[#allocation5 + $0x5f0] sm:$0xff] }
 0x1d7   :  { %v1441_v57 = vpack.c.bf16 %v230_v52, %v222_v51 }
 0x1db   :  { %1422 = vmatpush1.bf16.xpose.msra.mxu0 %v1421_v59  ;;  %v1443_v59 = vpack.c.bf16 %v247_v28, %v239_v33 }
 0x1dc   :  { %1424 = vmatprep.subr.bf16.mxu0 %v1423_v61  ;;  %v238_v61 = vld [vmem:[#allocation5 + $0x630] sm:$0xff] }
 0x1dd   :  { %1678 = vmatpush1.bf16.xpose.msra.mxu1 %v1677_v60  ;;  %v1699_v60 = vpack.c.bf16 %v503_v56, %v495_v55 }
 0x1de   :  { %1680 = vmatprep.subr.bf16.mxu1 %v1679_v62  ;;  %v246_v62 = vld [vmem:[#allocation5 + $0x670] sm:$0xff] }
 0x1df   :  { %v1445_v4 = vpack.c.bf16 %v246_v62, %v238_v61 }
 0x1e3   :  { %1426 = vmatpush1.bf16.xpose.msra.mxu0 %v1425_v6  ;;  %v1447_v6 = vpack.c.bf16 %v263_v1, %v255_v36 }
 0x1e4   :  { %1428 = vmatprep.subr.bf16.mxu0 %v1427_v8  ;;  %v254_v8 = vld [vmem:[#allocation5 + $0x6b0] sm:$0xff] }
 0x1e5   :  { %1682 = vmatpush1.bf16.xpose.msra.mxu1 %v1681_v7  ;;  %v1703_v7 = vpack.c.bf16 %v519_v3, %v511_v2 }
 0x1e6   :  { %1684 = vmatprep.subr.bf16.mxu1 %v1683_v9  ;;  %v262_v9 = vld [vmem:[#allocation5 + $0x6f0] sm:$0xff] }
 0x1e7   :  { %v1449_v17 = vpack.c.bf16 %v262_v9, %v254_v8 }
 0x1eb   :  { %1430 = vmatpush1.bf16.xpose.msra.mxu0 %v1429_v19  ;;  %v1451_v19 = vpack.c.bf16 %v279_v13, %v271_v12 }
 0x1ec   :  { %1432 = vmatprep.subr.bf16.mxu0 %v1431_v23  ;;  %v270_v23 = vld [vmem:[#allocation5 + $0x730] sm:$0xff] }
 0x1ed   :  { %1686 = vmatpush1.bf16.xpose.msra.mxu1 %v1685_v22  ;;  %v1707_v22 = vpack.c.bf16 %v535_v16, %v527_v14 }
 0x1ee   :  { %1688 = vmatprep.subr.bf16.mxu1 %v1687_v24  ;;  %v278_v24 = vld [vmem:[#allocation5 + $0x770] sm:$0xff] }
 0x1ef   :  { %v1453_v32 = vpack.c.bf16 %v278_v24, %v270_v23 }
 0x1f3   :  { %1434 = vmatpush1.bf16.xpose.msra.mxu0 %v1433_v34  ;;  %v1455_v34 = vpack.c.bf16 %v295_v29, %v287_v27 }
 0x1f4   :  { %1436 = vmatprep.subr.bf16.mxu0 %v1435_v37  ;;  %v286_v37 = vld [vmem:[#allocation5 + $0x7b0] sm:$0xff] }
 0x1f5   :  { %1690 = vmatpush1.bf16.xpose.msra.mxu1 %v1689_v35  ;;  %v1711_v35 = vpack.c.bf16 %v551_v31, %v543_v30 }
 0x1f6   :  { %1692 = vmatprep.subr.bf16.mxu1 %v1691_v38  ;;  %v294_v38 = vld [vmem:[#allocation5 + $0x7f0] sm:$0xff] }
 0x1f7   :  { %v1457_v41 = vpack.c.bf16 %v294_v38, %v286_v37 }
 0x1fb   :  { %1438 = vmatpush1.bf16.xpose.msra.mxu0 %v1437_v21 }
 0x1fc   :  { %1440 = vmatprep.subr.bf16.mxu0 %v1439_v48 }
 0x1fd   :  { %1694 = vmatpush1.bf16.xpose.msra.mxu1 %v1693_v47 }
 0x1fe   :  { %1696 = vmatprep.subr.bf16.mxu1 %v1695_v50 }
 0x203   :  { %1442 = vmatpush1.bf16.xpose.msra.mxu0 %v1441_v57 }
 0x204   :  { %1444 = vmatprep.subr.bf16.mxu0 %v1443_v59 }
 0x205   :  { %1698 = vmatpush1.bf16.xpose.msra.mxu1 %v1697_v58 }
 0x206   :  { %1700 = vmatprep.subr.bf16.mxu1 %v1699_v60 }
 0x20b   :  { %1446 = vmatpush1.bf16.xpose.msra.mxu0 %v1445_v4 }
 0x20c   :  { %1448 = vmatprep.subr.bf16.mxu0 %v1447_v6 }
 0x20d   :  { %1702 = vmatpush1.bf16.xpose.msra.mxu1 %v1701_v5 }
 0x20e   :  { %1704 = vmatprep.subr.bf16.mxu1 %v1703_v7 }
 0x213   :  { %1450 = vmatpush1.bf16.xpose.msra.mxu0 %v1449_v17 }
 0x214   :  { %1452 = vmatprep.subr.bf16.mxu0 %v1451_v19 }
 0x215   :  { %1706 = vmatpush1.bf16.xpose.msra.mxu1 %v1705_v18 }
 0x216   :  { %1708 = vmatprep.subr.bf16.mxu1 %v1707_v22 }
 0x21b   :  { %1454 = vmatpush1.bf16.xpose.msra.mxu0 %v1453_v32 }
 0x21c   :  { %1456 = vmatprep.subr.bf16.mxu0 %v1455_v34 }
 0x21d   :  { %1710 = vmatpush1.bf16.xpose.msra.mxu1 %v1709_v20 }
 0x21e   :  { %1712 = vmatprep.subr.bf16.mxu1 %v1711_v35 }
 0x223   :  { %1458 = vmatpush1.bf16.xpose.msra.mxu0 %v1457_v41 }
 0x225   :  { %1714 = vmatpush1.bf16.xpose.msra.mxu1 %v1713_v42 }
 0x22a   :  { %874 = vmatmul.mubr.f32.vlgmr.msra.gmra.mrb[0].mxu0 %v1891_v49 }
 0x22c   :  { %1158 = vmatmul.mubr.f32.vlgmr.msra.gmra.mrb[0].mxu1 %v1891_v49 }
 0x2fd   :  { %v875_v43 = vpop.f32.mrb[0].mxu0 }
 0x2fe   :  { %v877_v45 = vpop.f32.mrb[1].mxu0 }
 0x2ff   :  { %v1159_v44 = vpop.f32.mrb[0].mxu1  ;;  %v1168_v46 = vcombine.low %v875_v43, %v877_v45 }
 0x300   :  { %v1161_v21 = vpop.f32.mrb[1].mxu1 }
 0x301   :  { %v1169_v47 = vcombine.low %v1159_v44, %v1161_v21  ;;  %v1176_v48 = vrot.slane %v1168_v46, %v1859_v15 }
 0x303   :  { %v1183_v50 = vrot.slane %v1169_v47, %v1859_v15 }
 0x305   :  { %v1184_v51 = vcombine.low %v1176_v48, %v1183_v50 }
 0x307   :  { %1186 = vst [vmem:[#allocation7] sm:$0xff] %v1184_v51 }
 0x308   :  { %1790 = shalt.err (!%p1787_p6)
}
 0x309   :  { %s1791_s10 = scalar_lea.hbm %s1915_s2, 128 }
 0x30a   :  { %p1792_p7 = scmp.ne.s32.totalorder %s1915_s2, %s1791_s10  ;;  %p1795_p8 = scmp.lt.u32.totalorder %s1791_s10, %s1915_s2 }
 0x30c   :  { %p1797_p9 = pnand %p1795_p8, %p1792_p7 }
 0x30e   :  { %1800 = shalt.err (!%p1797_p9)
}
 0x30f   :  { %1196 = dma.vmem_to_hbm [thread:$0]  %s1194_s6, 128, %s1915_s2, [#allocation4]  }
 0x310   :  { %1805 = dma.done.wait [#allocation4], 128  }
 0x311   :  { %1806 = vsyncadd [#allocation4], 4294967168 }
 0x312   :  { %1200 = vsyncpa [#allocation3], 1 }
 0x313   :  { %1201 = vsyncpa [#allocation6], 1 }
 0x314   :  { %1202 = vsyncpa [#allocation4], 1 }

</bundles_post_ra>
